<compile_context>
chip_gen: v5e
topology: v5e:2x2
jax: 0.10.0
libtpu: 0.0.40
codegen_flags: <defaults>
</compile_context>

<pallas_src>
import functools

import jax
import jax.numpy as jnp
from jax.experimental import pallas as pl
from jax.experimental.pallas import tpu as pltpu

EPS = 1e-5


# ----------------------------------------------------------------------------
# In-kernel helpers
# ----------------------------------------------------------------------------
def _apply_act(y, alpha, act):
    if act == "prelu":
        return jnp.where(y >= 0, y, alpha * y)
    if act == "swish":
        return y * jax.nn.sigmoid(y)
    return jnp.maximum(y, 0.0)          # relu


# ----------------------------------------------------------------------------
# Fused dense-block kernel
# ----------------------------------------------------------------------------
def _make_block_kernel(*, T, pad_max, C0, G, L, cins, offs0_list, offs1_list,
                       gout0_list, act, first_block, last_block, C_total):
    """Builds the kernel body for one _DenseBlock (plus fused prologue /
    epilogue).  All sizes / offsets are static Python ints."""

    def kernel(*refs):
        pos = [0]

        def nxt():
            r = refs[pos[0]]
            pos[0] += 1
            return r

        x_ref = nxt()
        if first_block:
            wt0_ref = nxt()
            pk0_ref = nxt()
        layer_refs = [(nxt(), nxt(), nxt()) for _ in range(L)]
        if not last_block:
            wtr_ref = nxt()
            pkt_ref = nxt()
        else:
            pk5_ref = nxt()
        o_ref = nxt()
        slab = nxt()          # (Tp, C_total) f32 VMEM feature slab
        y0p = nxt()           # (Tp, G)       f32 VMEM padded stage-0 output

        f32 = jnp.float32

        # ---- zero the temporal halos once; they are never rewritten --------
        if pad_max > 0:
            slab[:pad_max, :] = jnp.zeros((pad_max, C_total), f32)
            slab[pad_max + T:, :] = jnp.zeros((pad_max, C_total), f32)
            y0p[:pad_max, :] = jnp.zeros((pad_max, G), f32)
            y0p[pad_max + T:, :] = jnp.zeros((pad_max, G), f32)

        # ---- prologue: block input channels -> slab[:, :C0] ----------------
        xb = x_ref[0].astype(f32)                       # (T, Cin_x)
        if first_block:
            # transition0: Conv1d(k=1, bias=False) -> BN -> PReLU (hard-coded)
            y = jnp.dot(xb, wt0_ref[...], preferred_element_type=f32)
            y = _apply_act(y * pk0_ref[0:1, :] + pk0_ref[1:2, :],
                           pk0_ref[2:3, :], "prelu")
            slab[pad_max:pad_max + T, :C0] = y
        else:
            slab[pad_max:pad_max + T, :C0] = xb

        # ---- dense layers (static unroll) -----------------------------------
        for li in range(L):
            w0_ref, w1_ref, ep_ref = layer_refs[li]
            Cin = cins[li]
            has_down = gout0_list[li] == 2 * G

            # stage 0 (+ folded 1x1 downsample): one wide im2col matmul
            x_cat = jnp.concatenate(
                [slab[o:o + T, :Cin] for o in offs0_list[li]], axis=-1)
            out0 = jnp.dot(x_cat, w0_ref[...], preferred_element_type=f32)
            y0 = _apply_act(out0[:, :G] * ep_ref[0:1, :] + ep_ref[1:2, :],
                            ep_ref[2:3, :], act)
            if has_down:
                res = out0[:, G:] + ep_ref[7:8, :]       # downsample + bias
            else:
                res = slab[pad_max:pad_max + T, :Cin]    # Cin == G identity

            # stage 1: y0 zero-padded in VMEM, one im2col matmul
            y0p[pad_max:pad_max + T, :] = y0
            y_cat = jnp.concatenate(
                [y0p[o:o + T, :] for o in offs1_list[li]], axis=-1)
            out1 = jnp.dot(y_cat, w1_ref[...], preferred_element_type=f32)
            y1 = _apply_act(out1 * ep_ref[3:4, :] + ep_ref[4:5, :],
                            ep_ref[5:6, :], act)

            # residual + relu_final; append the G new channels to the slab
            z = _apply_act(y1 + res, ep_ref[6:7, :], act)
            slab[pad_max:pad_max + T, Cin:Cin + G] = z

        # ---- epilogue -------------------------------------------------------
        feat = slab[pad_max:pad_max + T, :]              # (T, C_total)
        if not last_block:
            # _Transition: Conv1d(k=1,bias=False) -> BN -> act
            yt = jnp.dot(feat, wtr_ref[...], preferred_element_type=f32)
            yt = _apply_act(yt * pkt_ref[0:1, :] + pkt_ref[1:2, :],
                            pkt_ref[2:3, :], act)
            o_ref[...] = yt[None]
        else:
            # norm5: BatchNorm affine only
            o_ref[...] = (feat * pk5_ref[0:1, :] + pk5_ref[1:2, :])[None]

    return kernel


def dense_block_fused(x, params, cfg, bi, T):
    """Run one fused dense block (+ fused transition0 / transition / norm5)."""
    kset = cfg["kernel_size_set"]
    kmax = max(kset)
    relu_type = cfg["relu_type"]
    nblocks = len(cfg["block_config"])
    L = cfg["block_config"][bi]
    G = cfg["growth_rate_set"][bi]
    C0 = cfg["reduced_size"]
    first_block, last_block = bi == 0, bi == nblocks - 1

    dils = [cfg["dilation_size_set"][li % len(cfg["dilation_size_set"])]
            for li in range(L)]
    pads = [(kmax - 1) * d // 2 for d in dils]
    # Shared temporal halo, rounded up to a sublane multiple (8) so interior
    # rows / centre-tap slices start on a sublane boundary.
    pad_max = max(pads)
    pad_max = ((pad_max + 7) // 8) * 8 if pad_max else 0
    Tp = T + 2 * pad_max

    cins = [C0 + li * G for li in range(L)]
    C_total = C0 + L * G

    offs0_list, offs1_list, gout0_list = [], [], []
    for li in range(L):
        d, padl, Cin = dils[li], pads[li], cins[li]
        offs = [pad_max - padl + j * d for j in range(kmax)]
        offs0 = list(offs)
        has_down = Cin != G
        if has_down and kmax % 2 == 0:
            offs0.append(pad_max)    # extra centre tap carries the downsample
        offs0_list.append(tuple(offs0))
        offs1_list.append(tuple(offs))
        gout0_list.append(2 * G if has_down else G)

    layers = params[f"block{bi}"]

    args = [x]
    in_specs = [pl.BlockSpec((1, T, x.shape[-1]), lambda b: (b, 0, 0))]

    def add_full(a):
        args.append(a)
        in_specs.append(pl.BlockSpec(a.shape, lambda b: (0,) * a.ndim))

    if first_block:
        add_full(params["transition0"]["w"])
        add_full(params["transition0"]["p"])
    for li in range(L):
        add_full(layers[li]["w0"])
        add_full(layers[li]["w1"])
        add_full(layers[li]["ep"])
    if not last_block:
        add_full(params[f"transition{bi + 1}"]["w"])
        add_full(params[f"transition{bi + 1}"]["p"])
        Cout = C0
    else:
        add_full(params["norm5"])
        Cout = C_total

    kern = _make_block_kernel(
        T=T, pad_max=pad_max, C0=C0, G=G, L=L, cins=tuple(cins),
        offs0_list=tuple(offs0_list), offs1_list=tuple(offs1_list),
        gout0_list=tuple(gout0_list), act=relu_type,
        first_block=first_block, last_block=last_block, C_total=C_total)

    B = x.shape[0]
    return pl.pallas_call(
        kern,
        out_shape=jax.ShapeDtypeStruct((B, T, Cout), jnp.float32),
        grid=(B,),
        in_specs=in_specs,
        out_specs=pl.BlockSpec((1, T, Cout), lambda b: (b, 0, 0)),
        scratch_shapes=[pltpu.VMEM((Tp, C_total), jnp.float32),
                        pltpu.VMEM((Tp, G), jnp.float32)],
        compiler_params=pltpu.CompilerParams(
            dimension_semantics=("parallel",),
            vmem_limit_bytes=32 * 1024 * 1024),
    )(*args)


# ----------------------------------------------------------------------------
# Deterministic parameter init (shapes follow the PyTorch module __init__)
# ----------------------------------------------------------------------------
def _bn_fold(key, c):
    k1, k2, k3, k4 = jax.random.split(key, 4)
    gamma = jax.random.uniform(k1, (c,), jnp.float32, 0.5, 1.5)
    beta = 0.1 * jax.random.normal(k2, (c,), jnp.float32)
    mean = 0.1 * jax.random.normal(k3, (c,), jnp.float32)
    var = jax.random.uniform(k4, (c,), jnp.float32, 0.5, 1.5)
    scale = gamma / jnp.sqrt(var + EPS)
    shift = beta - mean * scale
    return scale, shift


def _branch_conv_params(key, cin, growth, kset, kmax):
    """Per-branch Conv1d(k)+bias+BN+PReLU, embedded (centred) into (kmax,cin,
    growth) so one tap-stacked matmul produces all branches contiguously."""
    num_k = len(kset)
    gb = growth // num_k
    w = jnp.zeros((kmax, cin, growth), jnp.float32)
    ss, bs, aa = [], [], []
    keys = jax.random.split(key, num_k)
    for ki, k in enumerate(kset):
        k1, k2, k3 = jax.random.split(keys[ki], 3)
        wb = 0.1 * jax.random.normal(k1, (k, cin, gb), jnp.float32)
        cb = 0.1 * jax.random.normal(k2, (gb,), jnp.float32)     # conv bias
        scale, shift = _bn_fold(k3, gb)
        alpha = 0.25 * jnp.ones((gb,), jnp.float32)              # PReLU init
        t0 = (kmax - k) // 2
        w = w.at[t0:t0 + k, :, ki * gb:(ki + 1) * gb].set(wb)
        ss.append(scale)
        bs.append(cb * scale + shift)        # fold conv bias into folded BN
        aa.append(alpha)
    return w, jnp.concatenate(ss), jnp.concatenate(bs), jnp.concatenate(aa)


def _init_dense_layer(key, n_in, growth, kset, kmax):
    k0, k1, kd = jax.random.split(key, 3)
    w0, s0, b0, a0 = _branch_conv_params(k0, n_in, growth, kset, kmax)
    w1, s1, b1, a1 = _branch_conv_params(k1, growth, growth, kset, kmax)
    af = 0.25 * jnp.ones((growth,), jnp.float32)                 # relu_final
    has_down = n_in != growth
    if has_down:      # downsample Conv1d(n_in, growth, 1) WITH bias, no BN
        kd1, kd2 = jax.random.split(kd)
        wd = 0.1 * jax.random.normal(kd1, (n_in, growth), jnp.float32)
        bd = 0.1 * jax.random.normal(kd2, (growth,), jnp.float32)
        if kmax % 2 == 1:
            ntaps0, jc = kmax, (kmax - 1) // 2
        else:                              # even kmax: add an extra centre tap
            ntaps0, jc = kmax + 1, kmax
        w0p = jnp.zeros((ntaps0, n_in, 2 * growth), jnp.float32)
        w0p = w0p.at[:kmax, :, :growth].set(w0)
        w0p = w0p.at[jc, :, growth:].set(wd)
        w0 = w0p
    else:
        bd = jnp.zeros((growth,), jnp.float32)
    ep = jnp.stack([s0, b0, a0, s1, b1, a1, af, bd], axis=0)     # (8, growth)
    return dict(w0=w0.reshape(w0.shape[0] * n_in, -1),
                w1=w1.reshape(kmax * growth, growth),
                ep=ep)


def _init_transition(key, cin, cout):
    k1, k2 = jax.random.split(key)
    w = 0.1 * jax.random.normal(k1, (cin, cout), jnp.float32)    # bias=False
    scale, shift = _bn_fold(k2, cout)
    alpha = 0.25 * jnp.ones((cout,), jnp.float32)
    return dict(w=w, p=jnp.stack([scale, shift, alpha], axis=0))  # (3, cout)


def _validate_cfg(cfg):
    kset = cfg["kernel_size_set"]
    kmax = max(kset)
    for k in kset:
        assert (kmax - k) % 2 == 0, "mixed-parity kernel sizes unsupported"
    for d in cfg["dilation_size_set"]:
        for k in kset:
            assert ((k - 1) * d) % 2 == 0, \
                "symmetric chomp needs even (k-1)*dilation"
    assert cfg["relu_type"] in ("prelu", "relu", "swish")


def init_params(key, cfg):
    _validate_cfg(cfg)
    kset, kmax = cfg["kernel_size_set"], max(cfg["kernel_size_set"])
    params = {}
    keys = iter(jax.random.split(key, 1024))

    params["transition0"] = _init_transition(next(keys), cfg["input_size"],
                                             cfg["reduced_size"])
    num_features = cfg["reduced_size"]
    nblocks = len(cfg["block_config"])
    for bi, num_layers in enumerate(cfg["block_config"]):
        growth = cfg["growth_rate_set"][bi]
        assert growth % len(kset) == 0
        layers = []
        for li in range(num_layers):
            n_in = num_features + li * growth
            layers.append(_init_dense_layer(next(keys), n_in, growth,
                                            kset, kmax))
        params[f"block{bi}"] = layers
        num_features += num_layers * growth
        if bi != nblocks - 1:
            params[f"transition{bi + 1}"] = _init_transition(
                next(keys), num_features, cfg["reduced_size"])
            num_features = cfg["reduced_size"]

    scale, shift = _bn_fold(next(keys), num_features)
    params["norm5"] = jnp.stack([scale, shift], axis=0)    # (2, num_features)
    return params, num_features


# ----------------------------------------------------------------------------
# Forward pass
# ----------------------------------------------------------------------------
def dense_tcn_forward(x_nct, params, cfg):
    x = jnp.transpose(x_nct, (0, 2, 1)).astype(jnp.float32)     # NCT -> BTC
    _, T, _ = x.shape
    for bi in range(len(cfg["block_config"])):
        x = dense_block_fused(x, params, cfg, bi, T)
    return jnp.transpose(x, (0, 2, 1))                          # back to NCT


# ----------------------------------------------------------------------------
if __name__ == "__main__":
    cfg = dict(
        block_config=(2, 2),
        growth_rate_set=(8, 8),
        input_size=16,
        reduced_size=16,
        kernel_size_set=(3, 5),
        dilation_size_set=(1, 2),
        relu_type="prelu",
    )
    key = jax.random.PRNGKey(0)
    kx, kp = jax.random.split(key)
    B, T = 2, 8
    # PyTorch-style NCT input: (batch, channels=input_size, time)
    x = jax.random.normal(kx, (B, cfg["input_size"], T), jnp.float32)

    params, num_features = init_params(kp, cfg)
    fwd = jax.jit(functools.partial(dense_tcn_forward, cfg=cfg))
    out = jax.block_until_ready(fwd(x, params))

    assert out.shape == (B, num_features, T), out.shape
    assert bool(jnp.all(jnp.isfinite(out)))
    print("KERNEL_OK")
</pallas_src>

<mosaic_0001>
module attributes {stable_mosaic.version = 11 : i64} {
  func.func @kernel(%arg0: i32, %arg1: memref<1x8x16xf32, #tpu.memory_space<vmem>>, %arg2: memref<80x16xf32, #tpu.memory_space<vmem>>, %arg3: memref<40x8xf32, #tpu.memory_space<vmem>>, %arg4: memref<8x8xf32, #tpu.memory_space<vmem>>, %arg5: memref<120x16xf32, #tpu.memory_space<vmem>>, %arg6: memref<40x8xf32, #tpu.memory_space<vmem>>, %arg7: memref<8x8xf32, #tpu.memory_space<vmem>>, %arg8: memref<2x32xf32, #tpu.memory_space<vmem>>, %arg9: memref<1x8x32xf32, #tpu.memory_space<vmem>>, %arg10: memref<24x32xf32, #tpu.memory_space<vmem>>, %arg11: memref<24x8xf32, #tpu.memory_space<vmem>>) attributes {dimension_semantics = [#tpu.dimension_semantics<parallel>], iteration_bounds = array<i64: 2>, scalar_prefetch = 0 : i64, scratch_operands = 2 : i64, tpu.core_type = #tpu.core_type<tc>, window_params = [{transform_indices = @transform_0, window_bounds = array<i64: 1, 8, 16>}, {pipeline_mode = #tpu.pipeline_mode<synchronous>, transform_indices = @transform_1, window_bounds = array<i64: 80, 16>}, {pipeline_mode = #tpu.pipeline_mode<synchronous>, transform_indices = @transform_2, window_bounds = array<i64: 40, 8>}, {pipeline_mode = #tpu.pipeline_mode<synchronous>, transform_indices = @transform_3, window_bounds = array<i64: 8, 8>}, {pipeline_mode = #tpu.pipeline_mode<synchronous>, transform_indices = @transform_4, window_bounds = array<i64: 120, 16>}, {pipeline_mode = #tpu.pipeline_mode<synchronous>, transform_indices = @transform_5, window_bounds = array<i64: 40, 8>}, {pipeline_mode = #tpu.pipeline_mode<synchronous>, transform_indices = @transform_6, window_bounds = array<i64: 8, 8>}, {pipeline_mode = #tpu.pipeline_mode<synchronous>, transform_indices = @transform_7, window_bounds = array<i64: 2, 32>}, {transform_indices = @transform_8, window_bounds = array<i64: 1, 8, 32>}]} {
    %cst = arith.constant 0.000000e+00 : f32
    %0 = vector.broadcast %cst : f32 to vector<8x32xf32>
    %c0 = arith.constant 0 : index
    %c0_0 = arith.constant 0 : index
    %1 = vector.load %arg10[%c0, %c0_0] : memref<24x32xf32, #tpu.memory_space<vmem>>, vector<8x32xf32>
    tpu.vector_store %arg10[%c0, %c0_0], %0 {strides = array<i32>} : memref<24x32xf32, #tpu.memory_space<vmem>>, vector<8x32xf32>,
    %cst_1 = arith.constant 0.000000e+00 : f32
    %2 = vector.broadcast %cst_1 : f32 to vector<8x32xf32>
    %c16 = arith.constant 16 : index
    %c0_2 = arith.constant 0 : index
    %3 = vector.load %arg10[%c16, %c0_2] : memref<24x32xf32, #tpu.memory_space<vmem>>, vector<8x32xf32>
    tpu.vector_store %arg10[%c16, %c0_2], %2 {strides = array<i32>} : memref<24x32xf32, #tpu.memory_space<vmem>>, vector<8x32xf32>,
    %cst_3 = arith.constant 0.000000e+00 : f32
    %4 = vector.broadcast %cst_3 : f32 to vector<8x8xf32>
    %c0_4 = arith.constant 0 : index
    %c0_5 = arith.constant 0 : index
    %5 = vector.load %arg11[%c0_4, %c0_5] : memref<24x8xf32, #tpu.memory_space<vmem>>, vector<8x8xf32>
    tpu.vector_store %arg11[%c0_4, %c0_5], %4 {strides = array<i32>} : memref<24x8xf32, #tpu.memory_space<vmem>>, vector<8x8xf32>,
    %cst_6 = arith.constant 0.000000e+00 : f32
    %6 = vector.broadcast %cst_6 : f32 to vector<8x8xf32>
    %c16_7 = arith.constant 16 : index
    %c0_8 = arith.constant 0 : index
    %7 = vector.load %arg11[%c16_7, %c0_8] : memref<24x8xf32, #tpu.memory_space<vmem>>, vector<8x8xf32>
    tpu.vector_store %arg11[%c16_7, %c0_8], %6 {strides = array<i32>} : memref<24x8xf32, #tpu.memory_space<vmem>>, vector<8x8xf32>,
    %c0_9 = arith.constant 0 : index
    %c0_10 = arith.constant 0 : index
    %c0_11 = arith.constant 0 : index
    %8 = vector.load %arg1[%c0_9, %c0_10, %c0_11] : memref<1x8x16xf32, #tpu.memory_space<vmem>>, vector<1x8x16xf32>
    %9 = vector.shape_cast %8 : vector<1x8x16xf32> to vector<8x16xf32>
    %c8 = arith.constant 8 : index
    %c0_12 = arith.constant 0 : index
    %10 = vector.load %arg10[%c8, %c0_12] : memref<24x32xf32, #tpu.memory_space<vmem>>, vector<8x16xf32>
    tpu.vector_store %arg10[%c8, %c0_12], %9 {strides = array<i32>} : memref<24x32xf32, #tpu.memory_space<vmem>>, vector<8x16xf32>,
    %c6 = arith.constant 6 : index
    %c0_13 = arith.constant 0 : index
    %11 = vector.load %arg10[%c6, %c0_13] : memref<24x32xf32, #tpu.memory_space<vmem>>, vector<8x16xf32>
    %c7 = arith.constant 7 : index
    %c0_14 = arith.constant 0 : index
    %12 = vector.load %arg10[%c7, %c0_14] : memref<24x32xf32, #tpu.memory_space<vmem>>, vector<8x16xf32>
    %c8_15 = arith.constant 8 : index
    %c0_16 = arith.constant 0 : index
    %13 = vector.load %arg10[%c8_15, %c0_16] : memref<24x32xf32, #tpu.memory_space<vmem>>, vector<8x16xf32>
    %c9 = arith.constant 9 : index
    %c0_17 = arith.constant 0 : index
    %14 = vector.load %arg10[%c9, %c0_17] : memref<24x32xf32, #tpu.memory_space<vmem>>, vector<8x16xf32>
    %c10 = arith.constant 10 : index
    %c0_18 = arith.constant 0 : index
    %15 = vector.load %arg10[%c10, %c0_18] : memref<24x32xf32, #tpu.memory_space<vmem>>, vector<8x16xf32>
    %16 = tpu.concatenate %11, %12, %13, %14, %15 in 1 : vector<8x16xf32>, vector<8x16xf32>, vector<8x16xf32>, vector<8x16xf32>, vector<8x16xf32> -> vector<8x80xf32>
    %c0_19 = arith.constant 0 : index
    %c0_20 = arith.constant 0 : index
    %17 = vector.load %arg2[%c0_19, %c0_20] : memref<80x16xf32, #tpu.memory_space<vmem>>, vector<80x16xf32>
    %cst_21 = arith.constant dense<0.000000e+00> : vector<8x16xf32>
    %18 = tpu.matmul %16, %17, %cst_21 {dimension_numbers = #tpu.dot_dimension_numbers<[1], [0], [0], [1], [0, 0, 1, 1], [], []>} : vector<8x80xf32>, vector<80x16xf32>, vector<8x16xf32> -> vector<8x16xf32>
    %19 = vector.extract_strided_slice %18 {offsets = [0, 0], sizes = [8, 8], strides = [1, 1]} : vector<8x16xf32> to vector<8x8xf32>
    %c0_22 = arith.constant 0 : index
    %c0_23 = arith.constant 0 : index
    %20 = vector.load %arg4[%c0_22, %c0_23] : memref<8x8xf32, #tpu.memory_space<vmem>>, vector<1x8xf32>
    %21 = vector.broadcast %20 : vector<1x8xf32> to vector<8x8xf32>
    %22 = arith.mulf %19, %21 : vector<8x8xf32>
    %c1 = arith.constant 1 : index
    %c0_24 = arith.constant 0 : index
    %23 = vector.load %arg4[%c1, %c0_24] : memref<8x8xf32, #tpu.memory_space<vmem>>, vector<1x8xf32>
    %24 = vector.broadcast %23 : vector<1x8xf32> to vector<8x8xf32>
    %25 = arith.addf %22, %24 : vector<8x8xf32>
    %c2 = arith.constant 2 : index
    %c0_25 = arith.constant 0 : index
    %26 = vector.load %arg4[%c2, %c0_25] : memref<8x8xf32, #tpu.memory_space<vmem>>, vector<1x8xf32>
    %cst_26 = arith.constant 0.000000e+00 : f32
    %27 = vector.broadcast %cst_26 : f32 to vector<8x8xf32>
    %28 = arith.cmpf oge, %25, %27 : vector<8x8xf32>
    %29 = vector.broadcast %26 : vector<1x8xf32> to vector<8x8xf32>
    %30 = arith.mulf %29, %25 : vector<8x8xf32>
    %31 = arith.select %28, %25, %30 : vector<8x8xi1>, vector<8x8xf32>
    %32 = vector.extract_strided_slice %18 {offsets = [0, 8], sizes = [8, 8], strides = [1, 1]} : vector<8x16xf32> to vector<8x8xf32>
    %c7_27 = arith.constant 7 : index
    %c0_28 = arith.constant 0 : index
    %33 = vector.load %arg4[%c7_27, %c0_28] : memref<8x8xf32, #tpu.memory_space<vmem>>, vector<1x8xf32>
    %34 = vector.broadcast %33 : vector<1x8xf32> to vector<8x8xf32>
    %35 = arith.addf %32, %34 : vector<8x8xf32>
    %c8_29 = arith.constant 8 : index
    %c0_30 = arith.constant 0 : index
    %36 = vector.load %arg11[%c8_29, %c0_30] : memref<24x8xf32, #tpu.memory_space<vmem>>, vector<8x8xf32>
    tpu.vector_store %arg11[%c8_29, %c0_30], %31 {strides = array<i32>} : memref<24x8xf32, #tpu.memory_space<vmem>>, vector<8x8xf32>,
    %c6_31 = arith.constant 6 : index
    %c0_32 = arith.constant 0 : index
    %37 = vector.load %arg11[%c6_31, %c0_32] : memref<24x8xf32, #tpu.memory_space<vmem>>, vector<8x8xf32>
    %c7_33 = arith.constant 7 : index
    %c0_34 = arith.constant 0 : index
    %38 = vector.load %arg11[%c7_33, %c0_34] : memref<24x8xf32, #tpu.memory_space<vmem>>, vector<8x8xf32>
    %c8_35 = arith.constant 8 : index
    %c0_36 = arith.constant 0 : index
    %39 = vector.load %arg11[%c8_35, %c0_36] : memref<24x8xf32, #tpu.memory_space<vmem>>, vector<8x8xf32>
    %c9_37 = arith.constant 9 : index
    %c0_38 = arith.constant 0 : index
    %40 = vector.load %arg11[%c9_37, %c0_38] : memref<24x8xf32, #tpu.memory_space<vmem>>, vector<8x8xf32>
    %c10_39 = arith.constant 10 : index
    %c0_40 = arith.constant 0 : index
    %41 = vector.load %arg11[%c10_39, %c0_40] : memref<24x8xf32, #tpu.memory_space<vmem>>, vector<8x8xf32>
    %42 = tpu.concatenate %37, %38, %39, %40, %41 in 1 : vector<8x8xf32>, vector<8x8xf32>, vector<8x8xf32>, vector<8x8xf32>, vector<8x8xf32> -> vector<8x40xf32>
    %c0_41 = arith.constant 0 : index
    %c0_42 = arith.constant 0 : index
    %43 = vector.load %arg3[%c0_41, %c0_42] : memref<40x8xf32, #tpu.memory_space<vmem>>, vector<40x8xf32>
    %cst_43 = arith.constant dense<0.000000e+00> : vector<8x8xf32>
    %44 = tpu.matmul %42, %43, %cst_43 {dimension_numbers = #tpu.dot_dimension_numbers<[1], [0], [0], [1], [0, 0, 1, 1], [], []>} : vector<8x40xf32>, vector<40x8xf32>, vector<8x8xf32> -> vector<8x8xf32>
    %c3 = arith.constant 3 : index
    %c0_44 = arith.constant 0 : index
    %45 = vector.load %arg4[%c3, %c0_44] : memref<8x8xf32, #tpu.memory_space<vmem>>, vector<1x8xf32>
    %46 = vector.broadcast %45 : vector<1x8xf32> to vector<8x8xf32>
    %47 = arith.mulf %44, %46 : vector<8x8xf32>
    %c4 = arith.constant 4 : index
    %c0_45 = arith.constant 0 : index
    %48 = vector.load %arg4[%c4, %c0_45] : memref<8x8xf32, #tpu.memory_space<vmem>>, vector<1x8xf32>
    %49 = vector.broadcast %48 : vector<1x8xf32> to vector<8x8xf32>
    %50 = arith.addf %47, %49 : vector<8x8xf32>
    %c5 = arith.constant 5 : index
    %c0_46 = arith.constant 0 : index
    %51 = vector.load %arg4[%c5, %c0_46] : memref<8x8xf32, #tpu.memory_space<vmem>>, vector<1x8xf32>
    %cst_47 = arith.constant 0.000000e+00 : f32
    %52 = vector.broadcast %cst_47 : f32 to vector<8x8xf32>
    %53 = arith.cmpf oge, %50, %52 : vector<8x8xf32>
    %54 = vector.broadcast %51 : vector<1x8xf32> to vector<8x8xf32>
    %55 = arith.mulf %54, %50 : vector<8x8xf32>
    %56 = arith.select %53, %50, %55 : vector<8x8xi1>, vector<8x8xf32>
    %57 = arith.addf %56, %35 : vector<8x8xf32>
    %c6_48 = arith.constant 6 : index
    %c0_49 = arith.constant 0 : index
    %58 = vector.load %arg4[%c6_48, %c0_49] : memref<8x8xf32, #tpu.memory_space<vmem>>, vector<1x8xf32>
    %cst_50 = arith.constant 0.000000e+00 : f32
    %59 = vector.broadcast %cst_50 : f32 to vector<8x8xf32>
    %60 = arith.cmpf oge, %57, %59 : vector<8x8xf32>
    %61 = vector.broadcast %58 : vector<1x8xf32> to vector<8x8xf32>
    %62 = arith.mulf %61, %57 : vector<8x8xf32>
    %63 = arith.select %60, %57, %62 : vector<8x8xi1>, vector<8x8xf32>
    %c8_51 = arith.constant 8 : index
    %c16_52 = arith.constant 16 : index
    %64 = vector.load %arg10[%c8_51, %c16_52] : memref<24x32xf32, #tpu.memory_space<vmem>>, vector<8x8xf32>
    tpu.vector_store %arg10[%c8_51, %c16_52], %63 {strides = array<i32>} : memref<24x32xf32, #tpu.memory_space<vmem>>, vector<8x8xf32>,
    %c4_53 = arith.constant 4 : index
    %c0_54 = arith.constant 0 : index
    %65 = vector.load %arg10[%c4_53, %c0_54] : memref<24x32xf32, #tpu.memory_space<vmem>>, vector<8x24xf32>
    %c6_55 = arith.constant 6 : index
    %c0_56 = arith.constant 0 : index
    %66 = vector.load %arg10[%c6_55, %c0_56] : memref<24x32xf32, #tpu.memory_space<vmem>>, vector<8x24xf32>
    %c8_57 = arith.constant 8 : index
    %c0_58 = arith.constant 0 : index
    %67 = vector.load %arg10[%c8_57, %c0_58] : memref<24x32xf32, #tpu.memory_space<vmem>>, vector<8x24xf32>
    %c10_59 = arith.constant 10 : index
    %c0_60 = arith.constant 0 : index
    %68 = vector.load %arg10[%c10_59, %c0_60] : memref<24x32xf32, #tpu.memory_space<vmem>>, vector<8x24xf32>
    %c12 = arith.constant 12 : index
    %c0_61 = arith.constant 0 : index
    %69 = vector.load %arg10[%c12, %c0_61] : memref<24x32xf32, #tpu.memory_space<vmem>>, vector<8x24xf32>
    %70 = tpu.concatenate %65, %66, %67, %68, %69 in 1 : vector<8x24xf32>, vector<8x24xf32>, vector<8x24xf32>, vector<8x24xf32>, vector<8x24xf32> -> vector<8x120xf32>
    %c0_62 = arith.constant 0 : index
    %c0_63 = arith.constant 0 : index
    %71 = vector.load %arg5[%c0_62, %c0_63] : memref<120x16xf32, #tpu.memory_space<vmem>>, vector<120x16xf32>
    %cst_64 = arith.constant dense<0.000000e+00> : vector<8x16xf32>
    %72 = tpu.matmul %70, %71, %cst_64 {dimension_numbers = #tpu.dot_dimension_numbers<[1], [0], [0], [1], [0, 0, 1, 1], [], []>} : vector<8x120xf32>, vector<120x16xf32>, vector<8x16xf32> -> vector<8x16xf32>
    %73 = vector.extract_strided_slice %72 {offsets = [0, 0], sizes = [8, 8], strides = [1, 1]} : vector<8x16xf32> to vector<8x8xf32>
    %c0_65 = arith.constant 0 : index
    %c0_66 = arith.constant 0 : index
    %74 = vector.load %arg7[%c0_65, %c0_66] : memref<8x8xf32, #tpu.memory_space<vmem>>, vector<1x8xf32>
    %75 = vector.broadcast %74 : vector<1x8xf32> to vector<8x8xf32>
    %76 = arith.mulf %73, %75 : vector<8x8xf32>
    %c1_67 = arith.constant 1 : index
    %c0_68 = arith.constant 0 : index
    %77 = vector.load %arg7[%c1_67, %c0_68] : memref<8x8xf32, #tpu.memory_space<vmem>>, vector<1x8xf32>
    %78 = vector.broadcast %77 : vector<1x8xf32> to vector<8x8xf32>
    %79 = arith.addf %76, %78 : vector<8x8xf32>
    %c2_69 = arith.constant 2 : index
    %c0_70 = arith.constant 0 : index
    %80 = vector.load %arg7[%c2_69, %c0_70] : memref<8x8xf32, #tpu.memory_space<vmem>>, vector<1x8xf32>
    %cst_71 = arith.constant 0.000000e+00 : f32
    %81 = vector.broadcast %cst_71 : f32 to vector<8x8xf32>
    %82 = arith.cmpf oge, %79, %81 : vector<8x8xf32>
    %83 = vector.broadcast %80 : vector<1x8xf32> to vector<8x8xf32>
    %84 = arith.mulf %83, %79 : vector<8x8xf32>
    %85 = arith.select %82, %79, %84 : vector<8x8xi1>, vector<8x8xf32>
    %86 = vector.extract_strided_slice %72 {offsets = [0, 8], sizes = [8, 8], strides = [1, 1]} : vector<8x16xf32> to vector<8x8xf32>
    %c7_72 = arith.constant 7 : index
    %c0_73 = arith.constant 0 : index
    %87 = vector.load %arg7[%c7_72, %c0_73] : memref<8x8xf32, #tpu.memory_space<vmem>>, vector<1x8xf32>
    %88 = vector.broadcast %87 : vector<1x8xf32> to vector<8x8xf32>
    %89 = arith.addf %86, %88 : vector<8x8xf32>
    %c8_74 = arith.constant 8 : index
    %c0_75 = arith.constant 0 : index
    %90 = vector.load %arg11[%c8_74, %c0_75] : memref<24x8xf32, #tpu.memory_space<vmem>>, vector<8x8xf32>
    tpu.vector_store %arg11[%c8_74, %c0_75], %85 {strides = array<i32>} : memref<24x8xf32, #tpu.memory_space<vmem>>, vector<8x8xf32>,
    %c4_76 = arith.constant 4 : index
    %c0_77 = arith.constant 0 : index
    %91 = vector.load %arg11[%c4_76, %c0_77] : memref<24x8xf32, #tpu.memory_space<vmem>>, vector<8x8xf32>
    %c6_78 = arith.constant 6 : index
    %c0_79 = arith.constant 0 : index
    %92 = vector.load %arg11[%c6_78, %c0_79] : memref<24x8xf32, #tpu.memory_space<vmem>>, vector<8x8xf32>
    %c8_80 = arith.constant 8 : index
    %c0_81 = arith.constant 0 : index
    %93 = vector.load %arg11[%c8_80, %c0_81] : memref<24x8xf32, #tpu.memory_space<vmem>>, vector<8x8xf32>
    %c10_82 = arith.constant 10 : index
    %c0_83 = arith.constant 0 : index
    %94 = vector.load %arg11[%c10_82, %c0_83] : memref<24x8xf32, #tpu.memory_space<vmem>>, vector<8x8xf32>
    %c12_84 = arith.constant 12 : index
    %c0_85 = arith.constant 0 : index
    %95 = vector.load %arg11[%c12_84, %c0_85] : memref<24x8xf32, #tpu.memory_space<vmem>>, vector<8x8xf32>
    %96 = tpu.concatenate %91, %92, %93, %94, %95 in 1 : vector<8x8xf32>, vector<8x8xf32>, vector<8x8xf32>, vector<8x8xf32>, vector<8x8xf32> -> vector<8x40xf32>
    %c0_86 = arith.constant 0 : index
    %c0_87 = arith.constant 0 : index
    %97 = vector.load %arg6[%c0_86, %c0_87] : memref<40x8xf32, #tpu.memory_space<vmem>>, vector<40x8xf32>
    %cst_88 = arith.constant dense<0.000000e+00> : vector<8x8xf32>
    %98 = tpu.matmul %96, %97, %cst_88 {dimension_numbers = #tpu.dot_dimension_numbers<[1], [0], [0], [1], [0, 0, 1, 1], [], []>} : vector<8x40xf32>, vector<40x8xf32>, vector<8x8xf32> -> vector<8x8xf32>
    %c3_89 = arith.constant 3 : index
    %c0_90 = arith.constant 0 : index
    %99 = vector.load %arg7[%c3_89, %c0_90] : memref<8x8xf32, #tpu.memory_space<vmem>>, vector<1x8xf32>
    %100 = vector.broadcast %99 : vector<1x8xf32> to vector<8x8xf32>
    %101 = arith.mulf %98, %100 : vector<8x8xf32>
    %c4_91 = arith.constant 4 : index
    %c0_92 = arith.constant 0 : index
    %102 = vector.load %arg7[%c4_91, %c0_92] : memref<8x8xf32, #tpu.memory_space<vmem>>, vector<1x8xf32>
    %103 = vector.broadcast %102 : vector<1x8xf32> to vector<8x8xf32>
    %104 = arith.addf %101, %103 : vector<8x8xf32>
    %c5_93 = arith.constant 5 : index
    %c0_94 = arith.constant 0 : index
    %105 = vector.load %arg7[%c5_93, %c0_94] : memref<8x8xf32, #tpu.memory_space<vmem>>, vector<1x8xf32>
    %cst_95 = arith.constant 0.000000e+00 : f32
    %106 = vector.broadcast %cst_95 : f32 to vector<8x8xf32>
    %107 = arith.cmpf oge, %104, %106 : vector<8x8xf32>
    %108 = vector.broadcast %105 : vector<1x8xf32> to vector<8x8xf32>
    %109 = arith.mulf %108, %104 : vector<8x8xf32>
    %110 = arith.select %107, %104, %109 : vector<8x8xi1>, vector<8x8xf32>
    %111 = arith.addf %110, %89 : vector<8x8xf32>
    %c6_96 = arith.constant 6 : index
    %c0_97 = arith.constant 0 : index
    %112 = vector.load %arg7[%c6_96, %c0_97] : memref<8x8xf32, #tpu.memory_space<vmem>>, vector<1x8xf32>
    %cst_98 = arith.constant 0.000000e+00 : f32
    %113 = vector.broadcast %cst_98 : f32 to vector<8x8xf32>
    %114 = arith.cmpf oge, %111, %113 : vector<8x8xf32>
    %115 = vector.broadcast %112 : vector<1x8xf32> to vector<8x8xf32>
    %116 = arith.mulf %115, %111 : vector<8x8xf32>
    %117 = arith.select %114, %111, %116 : vector<8x8xi1>, vector<8x8xf32>
    %c8_99 = arith.constant 8 : index
    %c24 = arith.constant 24 : index
    %118 = vector.load %arg10[%c8_99, %c24] : memref<24x32xf32, #tpu.memory_space<vmem>>, vector<8x8xf32>
    tpu.vector_store %arg10[%c8_99, %c24], %117 {strides = array<i32>} : memref<24x32xf32, #tpu.memory_space<vmem>>, vector<8x8xf32>,
    %c8_100 = arith.constant 8 : index
    %c0_101 = arith.constant 0 : index
    %119 = vector.load %arg10[%c8_100, %c0_101] : memref<24x32xf32, #tpu.memory_space<vmem>>, vector<8x32xf32>
    %c0_102 = arith.constant 0 : index
    %c0_103 = arith.constant 0 : index
    %120 = vector.load %arg8[%c0_102, %c0_103] : memref<2x32xf32, #tpu.memory_space<vmem>>, vector<1x32xf32>
    %121 = vector.broadcast %120 : vector<1x32xf32> to vector<8x32xf32>
    %122 = arith.mulf %119, %121 : vector<8x32xf32>
    %c1_104 = arith.constant 1 : index
    %c0_105 = arith.constant 0 : index
    %123 = vector.load %arg8[%c1_104, %c0_105] : memref<2x32xf32, #tpu.memory_space<vmem>>, vector<1x32xf32>
    %124 = vector.broadcast %123 : vector<1x32xf32> to vector<8x32xf32>
    %125 = arith.addf %122, %124 : vector<8x32xf32>
    %126 = vector.shape_cast %125 : vector<8x32xf32> to vector<1x8x32xf32>
    %c0_106 = arith.constant 0 : index
    %c0_107 = arith.constant 0 : index
    %c0_108 = arith.constant 0 : index
    %127 = vector.load %arg9[%c0_106, %c0_107, %c0_108] : memref<1x8x32xf32, #tpu.memory_space<vmem>>, vector<1x8x32xf32>
    tpu.vector_store %arg9[%c0_106, %c0_107, %c0_108], %126 {strides = array<i32>} : memref<1x8x32xf32, #tpu.memory_space<vmem>>, vector<1x8x32xf32>,
    return
  }
  func.func @transform_0(%arg0: i32) -> (i32, i32, i32) {
    %c0_i32 = arith.constant 0 : i32
    %c0_i32_0 = arith.constant 0 : i32
    %c0_i32_1 = arith.constant 0 : i32
    return %arg0, %c0_i32, %c0_i32_0 : i32, i32, i32
  }
  func.func @transform_1(%arg0: i32) -> (i32, i32) {
    %c0_i32 = arith.constant 0 : i32
    %c0_i32_0 = arith.constant 0 : i32
    %c0_i32_1 = arith.constant 0 : i32
    return %c0_i32, %c0_i32_0 : i32, i32
  }
  func.func @transform_2(%arg0: i32) -> (i32, i32) {
    %c0_i32 = arith.constant 0 : i32
    %c0_i32_0 = arith.constant 0 : i32
    %c0_i32_1 = arith.constant 0 : i32
    return %c0_i32, %c0_i32_0 : i32, i32
  }
  func.func @transform_3(%arg0: i32) -> (i32, i32) {
    %c0_i32 = arith.constant 0 : i32
    %c0_i32_0 = arith.constant 0 : i32
    %c0_i32_1 = arith.constant 0 : i32
    return %c0_i32, %c0_i32_0 : i32, i32
  }
  func.func @transform_4(%arg0: i32) -> (i32, i32) {
    %c0_i32 = arith.constant 0 : i32
    %c0_i32_0 = arith.constant 0 : i32
    %c0_i32_1 = arith.constant 0 : i32
    return %c0_i32, %c0_i32_0 : i32, i32
  }
  func.func @transform_5(%arg0: i32) -> (i32, i32) {
    %c0_i32 = arith.constant 0 : i32
    %c0_i32_0 = arith.constant 0 : i32
    %c0_i32_1 = arith.constant 0 : i32
    return %c0_i32, %c0_i32_0 : i32, i32
  }
  func.func @transform_6(%arg0: i32) -> (i32, i32) {
    %c0_i32 = arith.constant 0 : i32
    %c0_i32_0 = arith.constant 0 : i32
    %c0_i32_1 = arith.constant 0 : i32
    return %c0_i32, %c0_i32_0 : i32, i32
  }
  func.func @transform_7(%arg0: i32) -> (i32, i32) {
    %c0_i32 = arith.constant 0 : i32
    %c0_i32_0 = arith.constant 0 : i32
    %c0_i32_1 = arith.constant 0 : i32
    return %c0_i32, %c0_i32_0 : i32, i32
  }
  func.func @transform_8(%arg0: i32) -> (i32, i32, i32) {
    %c0_i32 = arith.constant 0 : i32
    %c0_i32_0 = arith.constant 0 : i32
    %c0_i32_1 = arith.constant 0 : i32
    return %arg0, %c0_i32, %c0_i32_0 : i32, i32, i32
  }
}

module attributes {stable_mosaic.version = 11 : i64} {
  func.func @kernel(%arg0: i32, %arg1: memref<1x8x16xf32, #tpu.memory_space<vmem>>, %arg2: memref<16x16xf32, #tpu.memory_space<vmem>>, %arg3: memref<3x16xf32, #tpu.memory_space<vmem>>, %arg4: memref<80x16xf32, #tpu.memory_space<vmem>>, %arg5: memref<40x8xf32, #tpu.memory_space<vmem>>, %arg6: memref<8x8xf32, #tpu.memory_space<vmem>>, %arg7: memref<120x16xf32, #tpu.memory_space<vmem>>, %arg8: memref<40x8xf32, #tpu.memory_space<vmem>>, %arg9: memref<8x8xf32, #tpu.memory_space<vmem>>, %arg10: memref<32x16xf32, #tpu.memory_space<vmem>>, %arg11: memref<3x16xf32, #tpu.memory_space<vmem>>, %arg12: memref<1x8x16xf32, #tpu.memory_space<vmem>>, %arg13: memref<24x32xf32, #tpu.memory_space<vmem>>, %arg14: memref<24x8xf32, #tpu.memory_space<vmem>>) attributes {dimension_semantics = [#tpu.dimension_semantics<parallel>], iteration_bounds = array<i64: 2>, scalar_prefetch = 0 : i64, scratch_operands = 2 : i64, tpu.core_type = #tpu.core_type<tc>, window_params = [{transform_indices = @transform_0, window_bounds = array<i64: 1, 8, 16>}, {pipeline_mode = #tpu.pipeline_mode<synchronous>, transform_indices = @transform_1, window_bounds = array<i64: 16, 16>}, {pipeline_mode = #tpu.pipeline_mode<synchronous>, transform_indices = @transform_2, window_bounds = array<i64: 3, 16>}, {pipeline_mode = #tpu.pipeline_mode<synchronous>, transform_indices = @transform_3, window_bounds = array<i64: 80, 16>}, {pipeline_mode = #tpu.pipeline_mode<synchronous>, transform_indices = @transform_4, window_bounds = array<i64: 40, 8>}, {pipeline_mode = #tpu.pipeline_mode<synchronous>, transform_indices = @transform_5, window_bounds = array<i64: 8, 8>}, {pipeline_mode = #tpu.pipeline_mode<synchronous>, transform_indices = @transform_6, window_bounds = array<i64: 120, 16>}, {pipeline_mode = #tpu.pipeline_mode<synchronous>, transform_indices = @transform_7, window_bounds = array<i64: 40, 8>}, {pipeline_mode = #tpu.pipeline_mode<synchronous>, transform_indices = @transform_8, window_bounds = array<i64: 8, 8>}, {pipeline_mode = #tpu.pipeline_mode<synchronous>, transform_indices = @transform_9, window_bounds = array<i64: 32, 16>}, {pipeline_mode = #tpu.pipeline_mode<synchronous>, transform_indices = @transform_10, window_bounds = array<i64: 3, 16>}, {transform_indices = @transform_11, window_bounds = array<i64: 1, 8, 16>}]} {
    %cst = arith.constant 0.000000e+00 : f32
    %0 = vector.broadcast %cst : f32 to vector<8x32xf32>
    %c0 = arith.constant 0 : index
    %c0_0 = arith.constant 0 : index
    %1 = vector.load %arg13[%c0, %c0_0] : memref<24x32xf32, #tpu.memory_space<vmem>>, vector<8x32xf32>
    tpu.vector_store %arg13[%c0, %c0_0], %0 {strides = array<i32>} : memref<24x32xf32, #tpu.memory_space<vmem>>, vector<8x32xf32>,
    %cst_1 = arith.constant 0.000000e+00 : f32
    %2 = vector.broadcast %cst_1 : f32 to vector<8x32xf32>
    %c16 = arith.constant 16 : index
    %c0_2 = arith.constant 0 : index
    %3 = vector.load %arg13[%c16, %c0_2] : memref<24x32xf32, #tpu.memory_space<vmem>>, vector<8x32xf32>
    tpu.vector_store %arg13[%c16, %c0_2], %2 {strides = array<i32>} : memref<24x32xf32, #tpu.memory_space<vmem>>, vector<8x32xf32>,
    %cst_3 = arith.constant 0.000000e+00 : f32
    %4 = vector.broadcast %cst_3 : f32 to vector<8x8xf32>
    %c0_4 = arith.constant 0 : index
    %c0_5 = arith.constant 0 : index
    %5 = vector.load %arg14[%c0_4, %c0_5] : memref<24x8xf32, #tpu.memory_space<vmem>>, vector<8x8xf32>
    tpu.vector_store %arg14[%c0_4, %c0_5], %4 {strides = array<i32>} : memref<24x8xf32, #tpu.memory_space<vmem>>, vector<8x8xf32>,
    %cst_6 = arith.constant 0.000000e+00 : f32
    %6 = vector.broadcast %cst_6 : f32 to vector<8x8xf32>
    %c16_7 = arith.constant 16 : index
    %c0_8 = arith.constant 0 : index
    %7 = vector.load %arg14[%c16_7, %c0_8] : memref<24x8xf32, #tpu.memory_space<vmem>>, vector<8x8xf32>
    tpu.vector_store %arg14[%c16_7, %c0_8], %6 {strides = array<i32>} : memref<24x8xf32, #tpu.memory_space<vmem>>, vector<8x8xf32>,
    %c0_9 = arith.constant 0 : index
    %c0_10 = arith.constant 0 : index
    %c0_11 = arith.constant 0 : index
    %8 = vector.load %arg1[%c0_9, %c0_10, %c0_11] : memref<1x8x16xf32, #tpu.memory_space<vmem>>, vector<1x8x16xf32>
    %9 = vector.shape_cast %8 : vector<1x8x16xf32> to vector<8x16xf32>
    %c0_12 = arith.constant 0 : index
    %c0_13 = arith.constant 0 : index
    %10 = vector.load %arg2[%c0_12, %c0_13] : memref<16x16xf32, #tpu.memory_space<vmem>>, vector<16x16xf32>
    %cst_14 = arith.constant dense<0.000000e+00> : vector<8x16xf32>
    %11 = tpu.matmul %9, %10, %cst_14 {dimension_numbers = #tpu.dot_dimension_numbers<[1], [0], [0], [1], [0, 0, 1, 1], [], []>} : vector<8x16xf32>, vector<16x16xf32>, vector<8x16xf32> -> vector<8x16xf32>
    %c0_15 = arith.constant 0 : index
    %c0_16 = arith.constant 0 : index
    %12 = vector.load %arg3[%c0_15, %c0_16] : memref<3x16xf32, #tpu.memory_space<vmem>>, vector<1x16xf32>
    %13 = vector.broadcast %12 : vector<1x16xf32> to vector<8x16xf32>
    %14 = arith.mulf %11, %13 : vector<8x16xf32>
    %c1 = arith.constant 1 : index
    %c0_17 = arith.constant 0 : index
    %15 = vector.load %arg3[%c1, %c0_17] : memref<3x16xf32, #tpu.memory_space<vmem>>, vector<1x16xf32>
    %16 = vector.broadcast %15 : vector<1x16xf32> to vector<8x16xf32>
    %17 = arith.addf %14, %16 : vector<8x16xf32>
    %c2 = arith.constant 2 : index
    %c0_18 = arith.constant 0 : index
    %18 = vector.load %arg3[%c2, %c0_18] : memref<3x16xf32, #tpu.memory_space<vmem>>, vector<1x16xf32>
    %cst_19 = arith.constant 0.000000e+00 : f32
    %19 = vector.broadcast %cst_19 : f32 to vector<8x16xf32>
    %20 = arith.cmpf oge, %17, %19 : vector<8x16xf32>
    %21 = vector.broadcast %18 : vector<1x16xf32> to vector<8x16xf32>
    %22 = arith.mulf %21, %17 : vector<8x16xf32>
    %23 = arith.select %20, %17, %22 : vector<8x16xi1>, vector<8x16xf32>
    %c8 = arith.constant 8 : index
    %c0_20 = arith.constant 0 : index
    %24 = vector.load %arg13[%c8, %c0_20] : memref<24x32xf32, #tpu.memory_space<vmem>>, vector<8x16xf32>
    tpu.vector_store %arg13[%c8, %c0_20], %23 {strides = array<i32>} : memref<24x32xf32, #tpu.memory_space<vmem>>, vector<8x16xf32>,
    %c6 = arith.constant 6 : index
    %c0_21 = arith.constant 0 : index
    %25 = vector.load %arg13[%c6, %c0_21] : memref<24x32xf32, #tpu.memory_space<vmem>>, vector<8x16xf32>
    %c7 = arith.constant 7 : index
    %c0_22 = arith.constant 0 : index
    %26 = vector.load %arg13[%c7, %c0_22] : memref<24x32xf32, #tpu.memory_space<vmem>>, vector<8x16xf32>
    %c8_23 = arith.constant 8 : index
    %c0_24 = arith.constant 0 : index
    %27 = vector.load %arg13[%c8_23, %c0_24] : memref<24x32xf32, #tpu.memory_space<vmem>>, vector<8x16xf32>
    %c9 = arith.constant 9 : index
    %c0_25 = arith.constant 0 : index
    %28 = vector.load %arg13[%c9, %c0_25] : memref<24x32xf32, #tpu.memory_space<vmem>>, vector<8x16xf32>
    %c10 = arith.constant 10 : index
    %c0_26 = arith.constant 0 : index
    %29 = vector.load %arg13[%c10, %c0_26] : memref<24x32xf32, #tpu.memory_space<vmem>>, vector<8x16xf32>
    %30 = tpu.concatenate %25, %26, %27, %28, %29 in 1 : vector<8x16xf32>, vector<8x16xf32>, vector<8x16xf32>, vector<8x16xf32>, vector<8x16xf32> -> vector<8x80xf32>
    %c0_27 = arith.constant 0 : index
    %c0_28 = arith.constant 0 : index
    %31 = vector.load %arg4[%c0_27, %c0_28] : memref<80x16xf32, #tpu.memory_space<vmem>>, vector<80x16xf32>
    %cst_29 = arith.constant dense<0.000000e+00> : vector<8x16xf32>
    %32 = tpu.matmul %30, %31, %cst_29 {dimension_numbers = #tpu.dot_dimension_numbers<[1], [0], [0], [1], [0, 0, 1, 1], [], []>} : vector<8x80xf32>, vector<80x16xf32>, vector<8x16xf32> -> vector<8x16xf32>
    %33 = vector.extract_strided_slice %32 {offsets = [0, 0], sizes = [8, 8], strides = [1, 1]} : vector<8x16xf32> to vector<8x8xf32>
    %c0_30 = arith.constant 0 : index
    %c0_31 = arith.constant 0 : index
    %34 = vector.load %arg6[%c0_30, %c0_31] : memref<8x8xf32, #tpu.memory_space<vmem>>, vector<1x8xf32>
    %35 = vector.broadcast %34 : vector<1x8xf32> to vector<8x8xf32>
    %36 = arith.mulf %33, %35 : vector<8x8xf32>
    %c1_32 = arith.constant 1 : index
    %c0_33 = arith.constant 0 : index
    %37 = vector.load %arg6[%c1_32, %c0_33] : memref<8x8xf32, #tpu.memory_space<vmem>>, vector<1x8xf32>
    %38 = vector.broadcast %37 : vector<1x8xf32> to vector<8x8xf32>
    %39 = arith.addf %36, %38 : vector<8x8xf32>
    %c2_34 = arith.constant 2 : index
    %c0_35 = arith.constant 0 : index
    %40 = vector.load %arg6[%c2_34, %c0_35] : memref<8x8xf32, #tpu.memory_space<vmem>>, vector<1x8xf32>
    %cst_36 = arith.constant 0.000000e+00 : f32
    %41 = vector.broadcast %cst_36 : f32 to vector<8x8xf32>
    %42 = arith.cmpf oge, %39, %41 : vector<8x8xf32>
    %43 = vector.broadcast %40 : vector<1x8xf32> to vector<8x8xf32>
    %44 = arith.mulf %43, %39 : vector<8x8xf32>
    %45 = arith.select %42, %39, %44 : vector<8x8xi1>, vector<8x8xf32>
    %46 = vector.extract_strided_slice %32 {offsets = [0, 8], sizes = [8, 8], strides = [1, 1]} : vector<8x16xf32> to vector<8x8xf32>
    %c7_37 = arith.constant 7 : index
    %c0_38 = arith.constant 0 : index
    %47 = vector.load %arg6[%c7_37, %c0_38] : memref<8x8xf32, #tpu.memory_space<vmem>>, vector<1x8xf32>
    %48 = vector.broadcast %47 : vector<1x8xf32> to vector<8x8xf32>
    %49 = arith.addf %46, %48 : vector<8x8xf32>
    %c8_39 = arith.constant 8 : index
    %c0_40 = arith.constant 0 : index
    %50 = vector.load %arg14[%c8_39, %c0_40] : memref<24x8xf32, #tpu.memory_space<vmem>>, vector<8x8xf32>
    tpu.vector_store %arg14[%c8_39, %c0_40], %45 {strides = array<i32>} : memref<24x8xf32, #tpu.memory_space<vmem>>, vector<8x8xf32>,
    %c6_41 = arith.constant 6 : index
    %c0_42 = arith.constant 0 : index
    %51 = vector.load %arg14[%c6_41, %c0_42] : memref<24x8xf32, #tpu.memory_space<vmem>>, vector<8x8xf32>
    %c7_43 = arith.constant 7 : index
    %c0_44 = arith.constant 0 : index
    %52 = vector.load %arg14[%c7_43, %c0_44] : memref<24x8xf32, #tpu.memory_space<vmem>>, vector<8x8xf32>
    %c8_45 = arith.constant 8 : index
    %c0_46 = arith.constant 0 : index
    %53 = vector.load %arg14[%c8_45, %c0_46] : memref<24x8xf32, #tpu.memory_space<vmem>>, vector<8x8xf32>
    %c9_47 = arith.constant 9 : index
    %c0_48 = arith.constant 0 : index
    %54 = vector.load %arg14[%c9_47, %c0_48] : memref<24x8xf32, #tpu.memory_space<vmem>>, vector<8x8xf32>
    %c10_49 = arith.constant 10 : index
    %c0_50 = arith.constant 0 : index
    %55 = vector.load %arg14[%c10_49, %c0_50] : memref<24x8xf32, #tpu.memory_space<vmem>>, vector<8x8xf32>
    %56 = tpu.concatenate %51, %52, %53, %54, %55 in 1 : vector<8x8xf32>, vector<8x8xf32>, vector<8x8xf32>, vector<8x8xf32>, vector<8x8xf32> -> vector<8x40xf32>
    %c0_51 = arith.constant 0 : index
    %c0_52 = arith.constant 0 : index
    %57 = vector.load %arg5[%c0_51, %c0_52] : memref<40x8xf32, #tpu.memory_space<vmem>>, vector<40x8xf32>
    %cst_53 = arith.constant dense<0.000000e+00> : vector<8x8xf32>
    %58 = tpu.matmul %56, %57, %cst_53 {dimension_numbers = #tpu.dot_dimension_numbers<[1], [0], [0], [1], [0, 0, 1, 1], [], []>} : vector<8x40xf32>, vector<40x8xf32>, vector<8x8xf32> -> vector<8x8xf32>
    %c3 = arith.constant 3 : index
    %c0_54 = arith.constant 0 : index
    %59 = vector.load %arg6[%c3, %c0_54] : memref<8x8xf32, #tpu.memory_space<vmem>>, vector<1x8xf32>
    %60 = vector.broadcast %59 : vector<1x8xf32> to vector<8x8xf32>
    %61 = arith.mulf %58, %60 : vector<8x8xf32>
    %c4 = arith.constant 4 : index
    %c0_55 = arith.constant 0 : index
    %62 = vector.load %arg6[%c4, %c0_55] : memref<8x8xf32, #tpu.memory_space<vmem>>, vector<1x8xf32>
    %63 = vector.broadcast %62 : vector<1x8xf32> to vector<8x8xf32>
    %64 = arith.addf %61, %63 : vector<8x8xf32>
    %c5 = arith.constant 5 : index
    %c0_56 = arith.constant 0 : index
    %65 = vector.load %arg6[%c5, %c0_56] : memref<8x8xf32, #tpu.memory_space<vmem>>, vector<1x8xf32>
    %cst_57 = arith.constant 0.000000e+00 : f32
    %66 = vector.broadcast %cst_57 : f32 to vector<8x8xf32>
    %67 = arith.cmpf oge, %64, %66 : vector<8x8xf32>
    %68 = vector.broadcast %65 : vector<1x8xf32> to vector<8x8xf32>
    %69 = arith.mulf %68, %64 : vector<8x8xf32>
    %70 = arith.select %67, %64, %69 : vector<8x8xi1>, vector<8x8xf32>
    %71 = arith.addf %70, %49 : vector<8x8xf32>
    %c6_58 = arith.constant 6 : index
    %c0_59 = arith.constant 0 : index
    %72 = vector.load %arg6[%c6_58, %c0_59] : memref<8x8xf32, #tpu.memory_space<vmem>>, vector<1x8xf32>
    %cst_60 = arith.constant 0.000000e+00 : f32
    %73 = vector.broadcast %cst_60 : f32 to vector<8x8xf32>
    %74 = arith.cmpf oge, %71, %73 : vector<8x8xf32>
    %75 = vector.broadcast %72 : vector<1x8xf32> to vector<8x8xf32>
    %76 = arith.mulf %75, %71 : vector<8x8xf32>
    %77 = arith.select %74, %71, %76 : vector<8x8xi1>, vector<8x8xf32>
    %c8_61 = arith.constant 8 : index
    %c16_62 = arith.constant 16 : index
    %78 = vector.load %arg13[%c8_61, %c16_62] : memref<24x32xf32, #tpu.memory_space<vmem>>, vector<8x8xf32>
    tpu.vector_store %arg13[%c8_61, %c16_62], %77 {strides = array<i32>} : memref<24x32xf32, #tpu.memory_space<vmem>>, vector<8x8xf32>,
    %c4_63 = arith.constant 4 : index
    %c0_64 = arith.constant 0 : index
    %79 = vector.load %arg13[%c4_63, %c0_64] : memref<24x32xf32, #tpu.memory_space<vmem>>, vector<8x24xf32>
    %c6_65 = arith.constant 6 : index
    %c0_66 = arith.constant 0 : index
    %80 = vector.load %arg13[%c6_65, %c0_66] : memref<24x32xf32, #tpu.memory_space<vmem>>, vector<8x24xf32>
    %c8_67 = arith.constant 8 : index
    %c0_68 = arith.constant 0 : index
    %81 = vector.load %arg13[%c8_67, %c0_68] : memref<24x32xf32, #tpu.memory_space<vmem>>, vector<8x24xf32>
    %c10_69 = arith.constant 10 : index
    %c0_70 = arith.constant 0 : index
    %82 = vector.load %arg13[%c10_69, %c0_70] : memref<24x32xf32, #tpu.memory_space<vmem>>, vector<8x24xf32>
    %c12 = arith.constant 12 : index
    %c0_71 = arith.constant 0 : index
    %83 = vector.load %arg13[%c12, %c0_71] : memref<24x32xf32, #tpu.memory_space<vmem>>, vector<8x24xf32>
    %84 = tpu.concatenate %79, %80, %81, %82, %83 in 1 : vector<8x24xf32>, vector<8x24xf32>, vector<8x24xf32>, vector<8x24xf32>, vector<8x24xf32> -> vector<8x120xf32>
    %c0_72 = arith.constant 0 : index
    %c0_73 = arith.constant 0 : index
    %85 = vector.load %arg7[%c0_72, %c0_73] : memref<120x16xf32, #tpu.memory_space<vmem>>, vector<120x16xf32>
    %cst_74 = arith.constant dense<0.000000e+00> : vector<8x16xf32>
    %86 = tpu.matmul %84, %85, %cst_74 {dimension_numbers = #tpu.dot_dimension_numbers<[1], [0], [0], [1], [0, 0, 1, 1], [], []>} : vector<8x120xf32>, vector<120x16xf32>, vector<8x16xf32> -> vector<8x16xf32>
    %87 = vector.extract_strided_slice %86 {offsets = [0, 0], sizes = [8, 8], strides = [1, 1]} : vector<8x16xf32> to vector<8x8xf32>
    %c0_75 = arith.constant 0 : index
    %c0_76 = arith.constant 0 : index
    %88 = vector.load %arg9[%c0_75, %c0_76] : memref<8x8xf32, #tpu.memory_space<vmem>>, vector<1x8xf32>
    %89 = vector.broadcast %88 : vector<1x8xf32> to vector<8x8xf32>
    %90 = arith.mulf %87, %89 : vector<8x8xf32>
    %c1_77 = arith.constant 1 : index
    %c0_78 = arith.constant 0 : index
    %91 = vector.load %arg9[%c1_77, %c0_78] : memref<8x8xf32, #tpu.memory_space<vmem>>, vector<1x8xf32>
    %92 = vector.broadcast %91 : vector<1x8xf32> to vector<8x8xf32>
    %93 = arith.addf %90, %92 : vector<8x8xf32>
    %c2_79 = arith.constant 2 : index
    %c0_80 = arith.constant 0 : index
    %94 = vector.load %arg9[%c2_79, %c0_80] : memref<8x8xf32, #tpu.memory_space<vmem>>, vector<1x8xf32>
    %cst_81 = arith.constant 0.000000e+00 : f32
    %95 = vector.broadcast %cst_81 : f32 to vector<8x8xf32>
    %96 = arith.cmpf oge, %93, %95 : vector<8x8xf32>
    %97 = vector.broadcast %94 : vector<1x8xf32> to vector<8x8xf32>
    %98 = arith.mulf %97, %93 : vector<8x8xf32>
    %99 = arith.select %96, %93, %98 : vector<8x8xi1>, vector<8x8xf32>
    %100 = vector.extract_strided_slice %86 {offsets = [0, 8], sizes = [8, 8], strides = [1, 1]} : vector<8x16xf32> to vector<8x8xf32>
    %c7_82 = arith.constant 7 : index
    %c0_83 = arith.constant 0 : index
    %101 = vector.load %arg9[%c7_82, %c0_83] : memref<8x8xf32, #tpu.memory_space<vmem>>, vector<1x8xf32>
    %102 = vector.broadcast %101 : vector<1x8xf32> to vector<8x8xf32>
    %103 = arith.addf %100, %102 : vector<8x8xf32>
    %c8_84 = arith.constant 8 : index
    %c0_85 = arith.constant 0 : index
    %104 = vector.load %arg14[%c8_84, %c0_85] : memref<24x8xf32, #tpu.memory_space<vmem>>, vector<8x8xf32>
    tpu.vector_store %arg14[%c8_84, %c0_85], %99 {strides = array<i32>} : memref<24x8xf32, #tpu.memory_space<vmem>>, vector<8x8xf32>,
    %c4_86 = arith.constant 4 : index
    %c0_87 = arith.constant 0 : index
    %105 = vector.load %arg14[%c4_86, %c0_87] : memref<24x8xf32, #tpu.memory_space<vmem>>, vector<8x8xf32>
    %c6_88 = arith.constant 6 : index
    %c0_89 = arith.constant 0 : index
    %106 = vector.load %arg14[%c6_88, %c0_89] : memref<24x8xf32, #tpu.memory_space<vmem>>, vector<8x8xf32>
    %c8_90 = arith.constant 8 : index
    %c0_91 = arith.constant 0 : index
    %107 = vector.load %arg14[%c8_90, %c0_91] : memref<24x8xf32, #tpu.memory_space<vmem>>, vector<8x8xf32>
    %c10_92 = arith.constant 10 : index
    %c0_93 = arith.constant 0 : index
    %108 = vector.load %arg14[%c10_92, %c0_93] : memref<24x8xf32, #tpu.memory_space<vmem>>, vector<8x8xf32>
    %c12_94 = arith.constant 12 : index
    %c0_95 = arith.constant 0 : index
    %109 = vector.load %arg14[%c12_94, %c0_95] : memref<24x8xf32, #tpu.memory_space<vmem>>, vector<8x8xf32>
    %110 = tpu.concatenate %105, %106, %107, %108, %109 in 1 : vector<8x8xf32>, vector<8x8xf32>, vector<8x8xf32>, vector<8x8xf32>, vector<8x8xf32> -> vector<8x40xf32>
    %c0_96 = arith.constant 0 : index
    %c0_97 = arith.constant 0 : index
    %111 = vector.load %arg8[%c0_96, %c0_97] : memref<40x8xf32, #tpu.memory_space<vmem>>, vector<40x8xf32>
    %cst_98 = arith.constant dense<0.000000e+00> : vector<8x8xf32>
    %112 = tpu.matmul %110, %111, %cst_98 {dimension_numbers = #tpu.dot_dimension_numbers<[1], [0], [0], [1], [0, 0, 1, 1], [], []>} : vector<8x40xf32>, vector<40x8xf32>, vector<8x8xf32> -> vector<8x8xf32>
    %c3_99 = arith.constant 3 : index
    %c0_100 = arith.constant 0 : index
    %113 = vector.load %arg9[%c3_99, %c0_100] : memref<8x8xf32, #tpu.memory_space<vmem>>, vector<1x8xf32>
    %114 = vector.broadcast %113 : vector<1x8xf32> to vector<8x8xf32>
    %115 = arith.mulf %112, %114 : vector<8x8xf32>
    %c4_101 = arith.constant 4 : index
    %c0_102 = arith.constant 0 : index
    %116 = vector.load %arg9[%c4_101, %c0_102] : memref<8x8xf32, #tpu.memory_space<vmem>>, vector<1x8xf32>
    %117 = vector.broadcast %116 : vector<1x8xf32> to vector<8x8xf32>
    %118 = arith.addf %115, %117 : vector<8x8xf32>
    %c5_103 = arith.constant 5 : index
    %c0_104 = arith.constant 0 : index
    %119 = vector.load %arg9[%c5_103, %c0_104] : memref<8x8xf32, #tpu.memory_space<vmem>>, vector<1x8xf32>
    %cst_105 = arith.constant 0.000000e+00 : f32
    %120 = vector.broadcast %cst_105 : f32 to vector<8x8xf32>
    %121 = arith.cmpf oge, %118, %120 : vector<8x8xf32>
    %122 = vector.broadcast %119 : vector<1x8xf32> to vector<8x8xf32>
    %123 = arith.mulf %122, %118 : vector<8x8xf32>
    %124 = arith.select %121, %118, %123 : vector<8x8xi1>, vector<8x8xf32>
    %125 = arith.addf %124, %103 : vector<8x8xf32>
    %c6_106 = arith.constant 6 : index
    %c0_107 = arith.constant 0 : index
    %126 = vector.load %arg9[%c6_106, %c0_107] : memref<8x8xf32, #tpu.memory_space<vmem>>, vector<1x8xf32>
    %cst_108 = arith.constant 0.000000e+00 : f32
    %127 = vector.broadcast %cst_108 : f32 to vector<8x8xf32>
    %128 = arith.cmpf oge, %125, %127 : vector<8x8xf32>
    %129 = vector.broadcast %126 : vector<1x8xf32> to vector<8x8xf32>
    %130 = arith.mulf %129, %125 : vector<8x8xf32>
    %131 = arith.select %128, %125, %130 : vector<8x8xi1>, vector<8x8xf32>
    %c8_109 = arith.constant 8 : index
    %c24 = arith.constant 24 : index
    %132 = vector.load %arg13[%c8_109, %c24] : memref<24x32xf32, #tpu.memory_space<vmem>>, vector<8x8xf32>
    tpu.vector_store %arg13[%c8_109, %c24], %131 {strides = array<i32>} : memref<24x32xf32, #tpu.memory_space<vmem>>, vector<8x8xf32>,
    %c8_110 = arith.constant 8 : index
    %c0_111 = arith.constant 0 : index
    %133 = vector.load %arg13[%c8_110, %c0_111] : memref<24x32xf32, #tpu.memory_space<vmem>>, vector<8x32xf32>
    %c0_112 = arith.constant 0 : index
    %c0_113 = arith.constant 0 : index
    %134 = vector.load %arg10[%c0_112, %c0_113] : memref<32x16xf32, #tpu.memory_space<vmem>>, vector<32x16xf32>
    %cst_114 = arith.constant dense<0.000000e+00> : vector<8x16xf32>
    %135 = tpu.matmul %133, %134, %cst_114 {dimension_numbers = #tpu.dot_dimension_numbers<[1], [0], [0], [1], [0, 0, 1, 1], [], []>} : vector<8x32xf32>, vector<32x16xf32>, vector<8x16xf32> -> vector<8x16xf32>
    %c0_115 = arith.constant 0 : index
    %c0_116 = arith.constant 0 : index
    %136 = vector.load %arg11[%c0_115, %c0_116] : memref<3x16xf32, #tpu.memory_space<vmem>>, vector<1x16xf32>
    %137 = vector.broadcast %136 : vector<1x16xf32> to vector<8x16xf32>
    %138 = arith.mulf %135, %137 : vector<8x16xf32>
    %c1_117 = arith.constant 1 : index
    %c0_118 = arith.constant 0 : index
    %139 = vector.load %arg11[%c1_117, %c0_118] : memref<3x16xf32, #tpu.memory_space<vmem>>, vector<1x16xf32>
    %140 = vector.broadcast %139 : vector<1x16xf32> to vector<8x16xf32>
    %141 = arith.addf %138, %140 : vector<8x16xf32>
    %c2_119 = arith.constant 2 : index
    %c0_120 = arith.constant 0 : index
    %142 = vector.load %arg11[%c2_119, %c0_120] : memref<3x16xf32, #tpu.memory_space<vmem>>, vector<1x16xf32>
    %cst_121 = arith.constant 0.000000e+00 : f32
    %143 = vector.broadcast %cst_121 : f32 to vector<8x16xf32>
    %144 = arith.cmpf oge, %141, %143 : vector<8x16xf32>
    %145 = vector.broadcast %142 : vector<1x16xf32> to vector<8x16xf32>
    %146 = arith.mulf %145, %141 : vector<8x16xf32>
    %147 = arith.select %144, %141, %146 : vector<8x16xi1>, vector<8x16xf32>
    %148 = vector.shape_cast %147 : vector<8x16xf32> to vector<1x8x16xf32>
    %c0_122 = arith.constant 0 : index
    %c0_123 = arith.constant 0 : index
    %c0_124 = arith.constant 0 : index
    %149 = vector.load %arg12[%c0_122, %c0_123, %c0_124] : memref<1x8x16xf32, #tpu.memory_space<vmem>>, vector<1x8x16xf32>
    tpu.vector_store %arg12[%c0_122, %c0_123, %c0_124], %148 {strides = array<i32>} : memref<1x8x16xf32, #tpu.memory_space<vmem>>, vector<1x8x16xf32>,
    return
  }
  func.func @transform_0(%arg0: i32) -> (i32, i32, i32) {
    %c0_i32 = arith.constant 0 : i32
    %c0_i32_0 = arith.constant 0 : i32
    %c0_i32_1 = arith.constant 0 : i32
    return %arg0, %c0_i32, %c0_i32_0 : i32, i32, i32
  }
  func.func @transform_1(%arg0: i32) -> (i32, i32) {
    %c0_i32 = arith.constant 0 : i32
    %c0_i32_0 = arith.constant 0 : i32
    %c0_i32_1 = arith.constant 0 : i32
    return %c0_i32, %c0_i32_0 : i32, i32
  }
  func.func @transform_2(%arg0: i32) -> (i32, i32) {
    %c0_i32 = arith.constant 0 : i32
    %c0_i32_0 = arith.constant 0 : i32
    %c0_i32_1 = arith.constant 0 : i32
    return %c0_i32, %c0_i32_0 : i32, i32
  }
  func.func @transform_3(%arg0: i32) -> (i32, i32) {
    %c0_i32 = arith.constant 0 : i32
    %c0_i32_0 = arith.constant 0 : i32
    %c0_i32_1 = arith.constant 0 : i32
    return %c0_i32, %c0_i32_0 : i32, i32
  }
  func.func @transform_4(%arg0: i32) -> (i32, i32) {
    %c0_i32 = arith.constant 0 : i32
    %c0_i32_0 = arith.constant 0 : i32
    %c0_i32_1 = arith.constant 0 : i32
    return %c0_i32, %c0_i32_0 : i32, i32
  }
  func.func @transform_5(%arg0: i32) -> (i32, i32) {
    %c0_i32 = arith.constant 0 : i32
    %c0_i32_0 = arith.constant 0 : i32
    %c0_i32_1 = arith.constant 0 : i32
    return %c0_i32, %c0_i32_0 : i32, i32
  }
  func.func @transform_6(%arg0: i32) -> (i32, i32) {
    %c0_i32 = arith.constant 0 : i32
    %c0_i32_0 = arith.constant 0 : i32
    %c0_i32_1 = arith.constant 0 : i32
    return %c0_i32, %c0_i32_0 : i32, i32
  }
  func.func @transform_7(%arg0: i32) -> (i32, i32) {
    %c0_i32 = arith.constant 0 : i32
    %c0_i32_0 = arith.constant 0 : i32
    %c0_i32_1 = arith.constant 0 : i32
    return %c0_i32, %c0_i32_0 : i32, i32
  }
  func.func @transform_8(%arg0: i32) -> (i32, i32) {
    %c0_i32 = arith.constant 0 : i32
    %c0_i32_0 = arith.constant 0 : i32
    %c0_i32_1 = arith.constant 0 : i32
    return %c0_i32, %c0_i32_0 : i32, i32
  }
  func.func @transform_9(%arg0: i32) -> (i32, i32) {
    %c0_i32 = arith.constant 0 : i32
    %c0_i32_0 = arith.constant 0 : i32
    %c0_i32_1 = arith.constant 0 : i32
    return %c0_i32, %c0_i32_0 : i32, i32
  }
  func.func @transform_10(%arg0: i32) -> (i32, i32) {
    %c0_i32 = arith.constant 0 : i32
    %c0_i32_0 = arith.constant 0 : i32
    %c0_i32_1 = arith.constant 0 : i32
    return %c0_i32, %c0_i32_0 : i32, i32
  }
  func.func @transform_11(%arg0: i32) -> (i32, i32, i32) {
    %c0_i32 = arith.constant 0 : i32
    %c0_i32_0 = arith.constant 0 : i32
    %c0_i32_1 = arith.constant 0 : i32
    return %arg0, %c0_i32, %c0_i32_0 : i32, i32, i32
  }
}

</mosaic_0001>

<bundles_post_ra>
// kernel: dense_tcn_forward.3
= control target key start
LH: loop header
LB: loop body
LE: loop exit
PB: predicated region body
PF: predicated region fallthrough
CT: control target
= control target key end

     0   :  { %13 = vsyncpa [#allocation5], 0  ;;  %s1206_s0 = inlined_call_operand.vmem [shape: f32[2,8,16], index: 0, kind: input, shape index: {}]   ;;  %s1207_s1 = inlined_call_operand.vmem [shape: f32[80,16], index: 1, kind: input, shape index: {}]   ;;  %s1208_s2 = inlined_call_operand.vmem [shape: f32[40,8], index: 2, kind: input, shape index: {}]   ;;  %s1209_s3 = inlined_call_operand.vmem [shape: f32[8,8], index: 3, kind: input, shape index: {}]   ;;  %s1210_s4 = inlined_call_operand.vmem [shape: f32[120,16], index: 4, kind: input, shape index: {}]   ;;  %s1211_s5 = inlined_call_operand.vmem [shape: f32[40,8], index: 5, kind: input, shape index: {}]   ;;  %s1212_s6 = inlined_call_operand.vmem [shape: f32[8,8], index: 6, kind: input, shape index: {}]   ;;  %s1213_s7 = inlined_call_operand.vmem [shape: f32[2,32], index: 7, kind: input, shape index: {}]   ;;  %s1214_s8 = inlined_call_operand.hbm [shape: f32[2,8,32], index: 8, kind: output, shape index: {}]  }
   0x1   :  { %15 = vsyncpa [#allocation5 + $0x1], 0  ;;  %s920_s27 = smov 0   ;;  %s922_s28 = smov 0  }
   0x2   :  { %s924_s29 = smov 0   ;;  %s926_s30 = smov 0  }
   0x3 LB: > { %s941_s9 = sadd.s32 4294967295, %s863_s30   ;;  %s720_s10 = sadd.s32 4294967294, %s863_s30   ;;  %s863_s30 = sphi %s926_s30, %s1227_s30   ;;  %s859_s29 = sphi %s924_s29, %s1226_s29   ;;  %s855_s28 = sphi %s922_s28, %s1225_s28   ;;  %s851_s27 = sphi %s920_s27, %s1224_s27  }
   0x4   : > { %s945_s11 = sadd.s32 1, %s863_s30   ;;  %s201_s12 = sadd.s32 1, %s859_s29 }
   0x5   : > { %s198_s13 = ssub.s32 %s863_s30, %s945_s11  ;;  %p211_p0 = scmp.ne.s32.totalorder %s859_s29, %s855_s28 }
   0x6   : > { %p199_p1 = scmp.eq.s32.totalorder %s198_s13, 0  ;;  %p212_p2 = scmp.eq.s32.totalorder %s941_s9, 1 }
   0x7   : > { %p217_p3 = scmp.ne.s32.totalorder %s855_s28, %s851_s27  ;;  %p218_p4 = scmp.eq.s32.totalorder %s720_s10, 1 }
   0x8   : > { %s956_s14 = scalar_select %p199_p1, %s859_s29, %s201_s12  }
   0x9   : > { %p958_p5 = por %p212_p2, %p211_p0  ;;  %p962_p6 = por %p218_p4, %p217_p3 }
   0xa   : > { %p723_p7 = scmp.ge.s32.totalorder %s863_s30, 1  ;;  %p264_p8 = scmp.lt.s32.totalorder %s863_s30, 3 }
   0xc   : > { %p265_p9 = pnand %p723_p7, %p264_p8 }
   0xd   : > { %p297_p10 = scmp.lt.s32.totalorder (!%p265_p9), %s941_s9, 1  ;;  %s866_s17 = smov (!%p265_p9), 16  }
   0xe   : > { %268 = sbr.rel (%p265_p9) target bundleno = 1344 (0x540), region = 52  ;;  %s867_s18 = smov (!%p265_p9), 48  }
   0xf   : > { %s1215_s19 = smov (!%p265_p9), 32   ;;  %s869_s20 = smov (!%p265_p9), 64  }
  0x10   : > { %s874_s25 = smov (!%p265_p9), 96   ;;  %s294_s21 = sand.u32 (!%p265_p9), 1, %s855_s28  }
  0x11   : > { %s731_s22 = sshll.u32 (!%p265_p9), %s941_s9, 3 }
  0x13   : > { %vm301_vm0 = vcmask 261120   ;;  %v346_v0 = vld [vmem:[%s1207_s1 + $0x48] sm:$0xff]  ;;  %v865_v1 = vmov 0.0   ;;  %v345_v2 = vld [vmem:[%s1207_s1 + $0x40] sm:$0xff]  ;;  %v344_v3 = vld [vmem:[%s1207_s1 + $0x38] sm:$0xff]  ;;  %s298_s23 = scalar_select %p297_p10, %s941_s9, 1 }
  0x14   : > { %302 = vst.msk [vmem:[#allocation2] sm:$0xff] %vm301_vm0, %v865_v1  ;;  %357 = vmatpush.msra.mxu0 %v346_v0  ;;  %vm308_vm1 = vcmask 130048   ;;  %v343_v4 = vld [vmem:[%s1207_s1 + $0x30] sm:$0xff]  ;;  %v342_v10 = vld [vmem:[%s1207_s1 + $0x28] sm:$0xff]  ;;  %v341_v11 = vld [vmem:[%s1207_s1 + $0x20] sm:$0xff]  ;;  %vm304_vm2 = vcmask 64512  }
  0x15   : > { %303 = vst.msk [vmem:[#allocation2 + $0x10] sm:$0xff] %vm301_vm0, %v865_v1  ;;  %s725_s24 = sshll.u32 %s298_s23, 3  ;;  %v340_v12 = vld [vmem:[%s1207_s1 + $0x18] sm:$0xff]  ;;  %v339_v13 = vld [vmem:[%s1207_s1 + $0x10] sm:$0xff]  ;;  %v338_v14 = vld [vmem:[%s1207_s1 + $0x8] sm:$0xff]  ;;  %vm333_vm3 = vcmask 392192  }
  0x16   : > { %358 = vmatpush.msra.mxu0 %v345_v2  ;;  %s300_s13 = scalar_lea.vmem %s1206_s0, %s725_s24  ;;  %v337_v15 = vld [vmem:[%s1207_s1] sm:$0xff]  ;;  %305 = vst.msk [vmem:[#allocation3] sm:$0xff] %vm304_vm2, %v865_v1  ;;  %vm335_vm4 = vcmask 523264   ;;  %vm347_vm5 = vcmask 654336   ;;  %v419_v39 = vld [vmem:[%s1208_s2 + $0x18] sm:$0xff]  ;;  %v418_v40 = vld [vmem:[%s1208_s2 + $0x10] sm:$0xff] }
  0x17   : > { %v307_v5 = vld [vmem:[%s300_s13] sm:$0xff]  ;;  %306 = vst.msk [vmem:[#allocation3 + $0x10] sm:$0xff] %vm304_vm2, %v865_v1  ;;  %s1216_s13 = smov 24   ;;  %v417_v41 = vld [vmem:[%s1208_s2 + $0x8] sm:$0xff]  ;;  %s1218_s23 = smov 120   ;;  %vm413_vm7 = vcmask 195584  }
  0x18   : > { %359 = vmatpush.msra.mxu0 %v344_v3  ;;  %309 = vst.msk [vmem:[#allocation2 + $0x8] sm:$0xff] %vm308_vm1, %v307_v5  ;;  %v783_v25 = vld [vmem:[%s1209_s3] ss:$0 sm:$0xff]  ;;  %v784_v26 = vld [vmem:[%s1209_s3 + $0x1] ss:$0 sm:$0xff]  ;;  %vm421_vm8 = vcmask 326656  }
  0x19   : > { %v785_v29 = vld [vmem:[%s1209_s3 + $0x2] ss:$0 sm:$0xff]  ;;  %v786_v37 = vld [vmem:[%s1209_s3 + $0x7] ss:$0 sm:$0xff]  ;;  %v787_v54 = vld [vmem:[%s1209_s3 + $0x3] ss:$0 sm:$0xff] }
  0x1a   : > { %360 = vmatpush.msra.mxu0 %v343_v4  ;;  %v420_v38 = vld [vmem:[%s1208_s2 + $0x20] sm:$0xff]  ;;  %v513_v3 = vld [vmem:[%s1210_s4 + $0x70] sm:$0xff]  ;;  %vm470_vm11 = vcmask 195712   ;;  %s1221_s24 = smov 24   ;;  %vm495_vm12 = vcmask 588800   ;;  %vm497_vm13 = vcmask 785408  }
  0x1b   : > { %436 = vmatpush.msra.mxu1 %v420_v38  ;;  %v416_v42 = vld [vmem:[%s1208_s2] sm:$0xff]  ;;  %519 = vmatpush.msra.mxu2 %v513_v3  ;;  %vm514_vm14 = vcmask 982016   ;;  %s646_s9 = scalar_lea.sflag [#allocation5], %s294_s21 }
  0x1c   : > { %361 = vmatpush.msra.mxu0 %v342_v10  ;;  %v788_v55 = vld [vmem:[%s1209_s3 + $0x4] ss:$0 sm:$0xff]  ;;  %v789_v58 = vld [vmem:[%s1209_s3 + $0x5] ss:$0 sm:$0xff]  ;;  %v790_v61 = vld [vmem:[%s1209_s3 + $0x6] ss:$0 sm:$0xff] }
  0x1d   : > { %437 = vmatpush.msra.mxu1 %v419_v39  ;;  %v511_v10 = vld [vmem:[%s1210_s4 + $0x60] sm:$0xff] }
  0x1e   : > { %362 = vmatpush.msra.mxu0 %v341_v11  ;;  %v510_v11 = vld [vmem:[%s1210_s4 + $0x58] sm:$0xff] }
  0x1f   : > { %v311_v6 = vld [vmem:[#allocation2 + $0x7] sm:$0xff]  ;;  %438 = vmatpush.msra.mxu1 %v418_v40 }
  0x20   : > { %v313_v7 = vld [vmem:[#allocation2 + $0x9] sm:$0xff]  ;;  %316 = vrot.lane.b32.xlu0 %v311_v6, %s866_s17  ;;  %363 = vmatpush.msra.mxu0 %v340_v12 }
  0x21   : > { %324 = vrot.lane.b32.xlu1 %v313_v7, %s867_s18  ;;  %v312_v8 = vld [vmem:[#allocation2 + $0x8] sm:$0xff]  ;;  %439 = vmatpush.msra.mxu1 %v417_v41  ;;  %v509_v12 = vld [vmem:[%s1210_s4 + $0x50] sm:$0xff] }
  0x22   : > { %v314_v9 = vld [vmem:[#allocation2 + $0xa] sm:$0xff]  ;;  %364 = vmatpush.msra.mxu0 %v339_v13 }
  0x23   : > { %v310_v18 = vld [vmem:[#allocation2 + $0x6] sm:$0xff]  ;;  %440 = vmatpush.msra.mxu1 %v416_v42 }
  0x24   : > { %365 = vmatpush.msra.mxu0 %v338_v14  ;;  %v508_v13 = vld [vmem:[%s1210_s4 + $0x48] sm:$0xff]  ;;  %v507_v14 = vld [vmem:[%s1210_s4 + $0x40] sm:$0xff] }
  0x26   : > { %366 = vmatpush.msra.mxu0 %v337_v15  ;;  %v506_v15 = vld [vmem:[%s1210_s4 + $0x38] sm:$0xff] }
  0x28   : > { %320 = vrot.lane.b32.xlu0 %v312_v8, %s1215_s19 }
  0x29   : > { %328 = vrot.lane.b32.xlu1 %v314_v9, %s869_s20  ;;  %s871_s20 = smov 8   ;;  %v512_v9 = vld [vmem:[%s1210_s4 + $0x68] sm:$0xff] }
  0x2a   : > { %520 = vmatpush.msra.mxu2 %v512_v9 }
  0x2c   : > { %521 = vmatpush.msra.mxu2 %v511_v10 }
  0x2e   : > { %522 = vmatpush.msra.mxu2 %v510_v11  ;;  %v799_v11 = vld [vmem:[%s1213_s7] ss:$0 sm:$0xff] }
  0x30   : > { %523 = vmatpush.msra.mxu2 %v509_v12  ;;  %v800_v12 = vld [vmem:[%s1213_s7 + $0x1] ss:$0 sm:$0xff] }
  0x32   : > { %524 = vmatpush.msra.mxu2 %v508_v13 }
  0x34   : > { %525 = vmatpush.msra.mxu2 %v507_v14 }
  0x36   : > { %526 = vmatpush.msra.mxu2 %v506_v15 }
  0x92   : > { %v317_v16 = vpop.permute.xlu0 %316 }
  0x93   : > { %v325_v17 = vpop.permute.xlu1 %324  ;;  %v331_v19 = vsel %vm308_vm1, %v310_v18, %v317_v16  ;;  %v505_v16 = vld [vmem:[%s1210_s4 + $0x30] sm:$0xff]  ;;  %v503_v18 = vld [vmem:[%s1210_s4 + $0x20] sm:$0xff] }
  0x94   : > { %527 = vmatpush.msra.mxu2 %v505_v16 }
  0x9a   : > { %v321_v20 = vpop.permute.xlu0 %320 }
  0x9b   : > { %v329_v21 = vpop.permute.xlu1 %328  ;;  %v332_v22 = vsel %vm301_vm0, %v331_v19, %v321_v20  ;;  %v502_v19 = vld [vmem:[%s1210_s4 + $0x18] sm:$0xff]  ;;  %v501_v20 = vld [vmem:[%s1210_s4 + $0x10] sm:$0xff] }
  0x9c   : > { %v334_v23 = vsel %vm333_vm3, %v332_v22, %v325_v17  ;;  %v504_v17 = vld [vmem:[%s1210_s4 + $0x28] sm:$0xff]  ;;  %v499_v22 = vld [vmem:[%s1210_s4] sm:$0xff] }
  0x9d   : > { %v336_v24 = vsel %vm335_vm4, %v334_v23, %v329_v21  ;;  %528 = vmatpush.msra.mxu2 %v504_v17  ;;  %v500_v21 = vld [vmem:[%s1210_s4 + $0x8] sm:$0xff] }
  0x9e   : > { %726 = vmatmul.msk.f32.vlgmr.msra.gmra.mxu0 %vm347_vm5, %v336_v24 }
  0x9f   : > { %529 = vmatpush.msra.mxu2 %v503_v18 }
  0xa1   : > { %530 = vmatpush.msra.mxu2 %v502_v19 }
  0xa3   : > { %531 = vmatpush.msra.mxu2 %v501_v20 }
  0xa5   : > { %532 = vmatpush.msra.mxu2 %v500_v21 }
  0xa7   : > { %533 = vmatpush.msra.mxu2 %v499_v22 }
 0x11b   : > { %v368_v27 = vpop.f32.mrf.mxu0 }
 0x11c   : > { %v373_v28 = vmul.f32 %v783_v25, %v368_v27 }
 0x11e   : > { %v376_v30 = vadd.f32 %v784_v26, %v373_v28 }
 0x120   : > { %vm378_vm6 = vcmp.ge.f32.partialorder %v376_v30, 0.0  ;;  %v380_v31 = vmul.f32 %v785_v29, %v376_v30 }
 0x122   : > { %v381_v32 = vsel %vm378_vm6, %v376_v30, %v380_v31 }
 0x123   : > { %389 = vst.msk [vmem:[#allocation3 + $0x8] sm:$0xff] %vm304_vm2, %v381_v32  ;;  %v791_v32 = vld [vmem:[%s1212_s6] ss:$0 sm:$0xff] }
 0x12a   : > { %v394_v33 = vld [vmem:[#allocation3 + $0xa] sm:$0xff] }
 0x12b   : > { %v393_v34 = vld [vmem:[#allocation3 + $0x9] sm:$0xff]  ;;  %408 = vrot.lane.b32.xlu1 %v394_v33, %s1215_s19  ;;  %s1223_s19 = smov 120  }
 0x12c   : > { %v391_v35 = vld [vmem:[#allocation3 + $0x7] sm:$0xff]  ;;  %404 = vrot.lane.b32.xlu0 %v393_v34, %s1216_s13  ;;  %s873_s13 = smov 72  }
 0x12d   : > { %396 = vrot.lane.b32.xlu2 %v391_v35, %s871_s20  ;;  %v392_v36 = vld [vmem:[#allocation3 + $0x8] sm:$0xff] }
 0x12e   : > { %v390_v47 = vld [vmem:[#allocation3 + $0x6] sm:$0xff] }
 0x12f   : > { %v792_v33 = vld [vmem:[%s1212_s6 + $0x1] ss:$0 sm:$0xff] }
 0x135   : > { %400 = vrot.lane.b32.xlu2 %v392_v36, %s866_s17  ;;  %v793_v36 = vld [vmem:[%s1212_s6 + $0x2] ss:$0 sm:$0xff] }
 0x13d   : > { %385 = vrot.lane.b32.xlu2 %v786_v37, %s871_s20 }
 0x187   : > { %v397_v43 = vpop.permute.xlu2 %396 }
 0x188   : > { %v411_v48 = vsel %vm304_vm2, %v390_v47, %v397_v43  ;;  %v794_v43 = vld [vmem:[%s1212_s6 + $0x7] ss:$0 sm:$0xff]  ;;  %v584_v47 = vld [vmem:[%s1211_s5 + $0x10] sm:$0xff] }
 0x18f   : > { %v401_v44 = vpop.permute.xlu2 %400 }
 0x190   : > { %v412_v49 = vsel %vm308_vm1, %v411_v48, %v401_v44  ;;  %v583_v48 = vld [vmem:[%s1211_s5 + $0x8] sm:$0xff] }
 0x197   : > { %v386_v45 = vpop.permute.xlu2 %385 }
 0x198   : > { %v388_v46 = vadd.f32 %v386_v45, %v368_v27  ;;  %v586_v45 = vld [vmem:[%s1211_s5 + $0x20] sm:$0xff] }
 0x199   : > { %601 = vmatpush.msra.mxu3 %v586_v45 }
 0x19a   : > { %457 = vrot.lane.b32.xlu0 %v388_v46, %s1218_s23  ;;  %v585_v46 = vld [vmem:[%s1211_s5 + $0x18] sm:$0xff] }
 0x19b   : > { %602 = vmatpush.msra.mxu3 %v585_v46 }
 0x19d   : > { %v409_v50 = vpop.permute.xlu1 %408  ;;  %603 = vmatpush.msra.mxu3 %v584_v47 }
 0x19e   : > { %v405_v51 = vpop.permute.xlu0 %404 }
 0x19f   : > { %v414_v52 = vsel %vm413_vm7, %v412_v49, %v405_v51  ;;  %604 = vmatpush.msra.mxu3 %v583_v48  ;;  %v582_v49 = vld [vmem:[%s1211_s5] sm:$0xff] }
 0x1a0   : > { %v415_v53 = vsel %vm301_vm0, %v414_v52, %v409_v50 }
 0x1a1   : > { %727 = vmatmul.msk.f32.vlgmr.msra.gmra.mxu1 %vm421_vm8, %v415_v53  ;;  %605 = vmatpush.msra.mxu3 %v582_v49 }
 0x20c   : > { %v458_v62 = vpop.permute.xlu0 %457 }
 0x21e   : > { %v442_v56 = vpop.f32.mrf.mxu1 }
 0x21f   : > { %v447_v57 = vmul.f32 %v787_v54, %v442_v56 }
 0x221   : > { %v450_v59 = vadd.f32 %v788_v55, %v447_v57 }
 0x223   : > { %vm452_vm9 = vcmp.ge.f32.partialorder %v450_v59, 0.0  ;;  %v454_v60 = vmul.f32 %v789_v58, %v450_v59 }
 0x225   : > { %v455_v63 = vsel %vm452_vm9, %v450_v59, %v454_v60 }
 0x226   : > { %v460_v0 = vadd.f32 %v458_v62, %v455_v63  ;;  %v796_v62 = vld [vmem:[%s1212_s6 + $0x4] ss:$0 sm:$0xff] }
 0x228   : > { %vm462_vm10 = vcmp.ge.f32.partialorder %v460_v0, 0.0  ;;  %v464_v1 = vmul.f32 %v790_v61, %v460_v0  ;;  %v795_v61 = vld [vmem:[%s1212_s6 + $0x3] ss:$0 sm:$0xff] }
 0x22a   : > { %v465_v2 = vsel %vm462_vm10, %v460_v0, %v464_v1  ;;  %v797_v1 = vld [vmem:[%s1212_s6 + $0x5] ss:$0 sm:$0xff] }
 0x22b   : > { %467 = vrot.lane.b32.xlu1 %v465_v2, %s866_s17 }
 0x29d   : > { %v468_v4 = vpop.permute.xlu1 %467 }
 0x29e   : > { %471 = vst.msk [vmem:[#allocation2 + $0x8] sm:$0xff] %vm470_vm11, %v468_v4  ;;  %v798_v4 = vld [vmem:[%s1212_s6 + $0x6] ss:$0 sm:$0xff] }
 0x2a5   : > { %v475_v5 = vld [vmem:[#allocation2 + $0xa] sm:$0xff] }
 0x2a6   : > { %v474_v6 = vld [vmem:[#allocation2 + $0x8] sm:$0xff]  ;;  %486 = vrot.lane.b32.xlu1 %v475_v5, %s873_s13 }
 0x2a7   : > { %v473_v7 = vld [vmem:[#allocation2 + $0x6] sm:$0xff]  ;;  %482 = vrot.lane.b32.xlu0 %v474_v6, %s867_s18  ;;  %s1222_s18 = smov 32  }
 0x2a8   : > { %478 = vrot.lane.b32.xlu2 %v473_v7, %s1221_s24  ;;  %v476_v8 = vld [vmem:[#allocation2 + $0xc] sm:$0xff]  ;;  %v472_v24 = vld [vmem:[#allocation2 + $0x4] sm:$0xff] }
 0x2b0   : > { %490 = vrot.lane.b32.xlu2 %v476_v8, %s874_s25  ;;  %s656_s25 = scalar_lea.hbm %s1214_s8, %s731_s22 }
 0x2b1   : > { %s660_s12 = sshll.u32 %s656_s25, 4  ;;  %s661_s12 = int_to_ptr.hbm [resolvable:$true] %s660_s12 }
 0x302   : > { %v479_v23 = vpop.permute.xlu2 %478 }
 0x303   : > { %v493_v25 = vsel %vm413_vm7, %v472_v24, %v479_v23 }
 0x30a   : > { %v491_v29 = vpop.permute.xlu2 %490 }
 0x318   : > { %v487_v26 = vpop.permute.xlu1 %486 }
 0x319   : > { %v483_v27 = vpop.permute.xlu0 %482 }
 0x31a   : > { %v494_v28 = vsel %vm333_vm3, %v493_v25, %v483_v27  ;;  %vm635_vm3 = vcmask 261312  }
 0x31b   : > { %v496_v30 = vsel %vm495_vm12, %v494_v28, %v487_v26 }
 0x31c   : > { %v498_v31 = vsel %vm497_vm13, %v496_v30, %v491_v29 }
 0x31d   : > { %728 = vmatmul.msk.f32.vlgmr.msra.gmra.mxu2 %vm514_vm14, %v498_v31 }
 0x3a0   : > { %v535_v34 = vpop.f32.mrf.mxu2 }
 0x3a1   : > { %v540_v35 = vmul.f32 %v791_v32, %v535_v34 }
 0x3a3   : > { %v543_v37 = vadd.f32 %v792_v33, %v540_v35 }
 0x3a5   : > { %vm545_vm15 = vcmp.ge.f32.partialorder %v543_v37, 0.0  ;;  %v547_v38 = vmul.f32 %v793_v36, %v543_v37 }
 0x3a7   : > { %v548_v39 = vsel %vm545_vm15, %v543_v37, %v547_v38 }
 0x3a8   : > { %556 = vst.msk [vmem:[#allocation3 + $0x8] sm:$0xff] %vm304_vm2, %v548_v39 }
 0x3af   : > { %v560_v40 = vld [vmem:[#allocation3 + $0xa] sm:$0xff] }
 0x3b0   : > { %v559_v41 = vld [vmem:[#allocation3 + $0x8] sm:$0xff]  ;;  %571 = vrot.lane.b32.xlu2 %v560_v40, %s1221_s24 }
 0x3b1   : > { %v558_v42 = vld [vmem:[#allocation3 + $0x6] sm:$0xff]  ;;  %567 = vrot.lane.b32.xlu1 %v559_v41, %s866_s17 }
 0x3b2   : > { %563 = vrot.lane.b32.xlu0 %v558_v42, %s871_s20  ;;  %v561_v44 = vld [vmem:[#allocation3 + $0xc] sm:$0xff]  ;;  %v557_v52 = vld [vmem:[#allocation3 + $0x4] sm:$0xff] }
 0x3b9   : > { %552 = vrot.lane.b32.xlu1 %v794_v43, %s871_s20  ;;  %s724_s20 = sshll.u32 %s294_s21, 3 }
 0x3ba   : > { %575 = vrot.lane.b32.xlu0 %v561_v44, %s1222_s18 }
 0x40a   : > { %v572_v55 = vpop.permute.xlu2 %571 }
 0x423   : > { %v568_v50 = vpop.permute.xlu1 %567 }
 0x424   : > { %v564_v51 = vpop.permute.xlu0 %563 }
 0x425   : > { %v578_v53 = vsel %vm304_vm2, %v557_v52, %v564_v51 }
 0x426   : > { %v579_v54 = vsel %vm308_vm1, %v578_v53, %v568_v50 }
 0x427   : > { %v580_v59 = vsel %vm413_vm7, %v579_v54, %v572_v55 }
 0x42b   : > { %v553_v56 = vpop.permute.xlu1 %552 }
 0x42c   : > { %v555_v57 = vadd.f32 %v553_v56, %v535_v34  ;;  %v576_v58 = vpop.permute.xlu0 %575 }
 0x42d   : > { %v581_v60 = vsel %vm301_vm0, %v580_v59, %v576_v58 }
 0x42e   : > { %729 = vmatmul.msk.f32.vlgmr.msra.gmra.mxu3 %vm421_vm8, %v581_v60  ;;  %622 = vrot.lane.b32.xlu2 %v555_v57, %s1223_s19  ;;  %s815_s19 = sshra.s32 %s661_s12, 4  ;;  %s816_s19 = int_to_ptr.hbm [resolvable:$true] %s815_s19 }
 0x42f   : > { %s817_s18 = scalar_lea.hbm %s816_s19, 8  ;;  %p822_p0 = scmp.lt.s32.totalorder %s816_s19, %s1214_s8 }
 0x430   : > { %p818_p11 = scmp.ne.s32.totalorder %s816_s19, %s817_s18 }
 0x432   : > { %p819_p12 = pnand %p818_p11, %p958_p5 }
 0x434   : > { %p820_p13 = pneg %p819_p12 }
 0x488   : > { %v623_v5 = vpop.permute.xlu2 %622 }
 0x4b1   : > { %v607_v63 = vpop.f32.mrf.mxu3 }
 0x4b2   : > { %v612_v0 = vmul.f32 %v795_v61, %v607_v63 }
 0x4b4   : > { %v615_v2 = vadd.f32 %v796_v62, %v612_v0 }
 0x4b6   : > { %vm617_vm1 = vcmp.ge.f32.partialorder %v615_v2, 0.0  ;;  %v619_v3 = vmul.f32 %v797_v1, %v615_v2 }
 0x4b8   : > { %v620_v6 = vsel %vm617_vm1, %v615_v2, %v619_v3 }
 0x4b9   : > { %v625_v7 = vadd.f32 %v623_v5, %v620_v6 }
 0x4bb   : > { %vm627_vm2 = vcmp.ge.f32.partialorder %v625_v7, 0.0  ;;  %v629_v8 = vmul.f32 %v798_v4, %v625_v7 }
 0x4bd   : > { %v630_v9 = vsel %vm627_vm2, %v625_v7, %v629_v8 }
 0x4be   : > { %632 = vrot.lane.b32.xlu0 %v630_v9, %s1221_s24  ;;  %s296_s24 = scalar_lea.vmem [#allocation4], %s724_s20  ;;  %s821_s20 = scalar_lea.hbm %s1214_s8, 16 }
 0x4bf   : > { %s658_s10 = sshll.u32 %s296_s24, 4  ;;  %p823_p1 = scmp.lt.s32.totalorder %s821_s20, %s817_s18  ;;  %s659_s10 = int_to_ptr.vmem [resolvable:$true] %s658_s10 }
 0x4c1   : > { %p824_p2 = por %p823_p1, %p822_p0 }
 0x4c3   : > { %p825_p3 = pnand %p824_p2, %p820_p13 }
 0x530   : > { %v633_v10 = vpop.permute.xlu0 %632 }
 0x531   : > { %636 = vst.msk [vmem:[#allocation2 + $0x8] sm:$0xff] %vm635_vm3, %v633_v10 }
 0x538   : > { %v637_v13 = vld [vmem:[#allocation2 + $0x8] sm:$0xff] }
 0x539   : > { %v640_v14 = vmul.f32 %v799_v11, %v637_v13 }
 0x53b   : > { %v643_v15 = vadd.f32 %v800_v12, %v640_v14 }
 0x53d   : > { %644 = vst.msk [vmem:[%s296_s24] sm:$0xff] %vm301_vm0, %v643_v15 }
 0x53e   : > { %828 = shalt.err (!%p825_p3)
}
 0x53f   : > { %734 = dma.vmem_to_hbm [thread:$0]  (%p958_p5), %s659_s10, 128, %s661_s12, %s646_s9  }
 0x540 PF: > { %p740_p4 = scmp.ge.s32.totalorder %s863_s30, 2  ;;  %s672_s21 = sand.u32 1, %s851_s27  }
 0x541   : > { %s673_s26 = scalar_lea.sflag [#allocation5], %s672_s21 }
 0x542   : > { %p737_p7 = pnand %p740_p4, %p962_p6 }
 0x544   : > { %p738_p8 = pneg %p737_p7 }
 0x546   : > { %846 = dma.done.wait (%p738_p8), %s673_s26, 128  }
 0x547   : > { %848 = vsyncadd (%p738_p8), %s673_s26, 4294967168  ;;  %p18_p9 = scmp.ge.s32.totalorder %s945_s11, 4   ;;  %s1224_s27 = smov %s855_s28 }
 0x548   : > { %s1225_s28 = smov %s859_s29  ;;  %s1226_s29 = smov %s956_s14 }
 0x549   : > { %s1227_s30 = smov %s945_s11  ;;  %20 = sbr.rel (!%p18_p9) target bundleno = 3 (0x3), region = 87 }
 0x54e   :  { %679 = vsyncpa [#allocation5], 1 }
 0x54f   :  { %681 = vsyncpa [#allocation5 + $0x1], 1 }

// kernel: dense_tcn_forward.2
= control target key start
LH: loop header
LB: loop body
LE: loop exit
PB: predicated region body
PF: predicated region fallthrough
CT: control target
= control target key end

     0   :  { %s980_s17 = smov 0   ;;  %s1237_s0 = inlined_call_operand.vmem [shape: f32[2,8,16], index: 0, kind: input, shape index: {}]   ;;  %s1238_s1 = inlined_call_operand.vmem [shape: f32[16,16], index: 1, kind: input, shape index: {}]   ;;  %s1239_s2 = inlined_call_operand.vmem [shape: f32[3,16], index: 2, kind: input, shape index: {}]   ;;  %s1240_s3 = inlined_call_operand.vmem [shape: f32[80,16], index: 3, kind: input, shape index: {}]   ;;  %s1241_s4 = inlined_call_operand.vmem [shape: f32[40,8], index: 4, kind: input, shape index: {}]   ;;  %s1242_s5 = inlined_call_operand.vmem [shape: f32[8,8], index: 5, kind: input, shape index: {}]   ;;  %s1243_s6 = inlined_call_operand.vmem [shape: f32[120,16], index: 6, kind: input, shape index: {}]   ;;  %s1244_s7 = inlined_call_operand.vmem [shape: f32[40,8], index: 7, kind: input, shape index: {}]   ;;  %s1245_s8 = inlined_call_operand.vmem [shape: f32[8,8], index: 8, kind: input, shape index: {}]   ;;  %s1246_s9 = inlined_call_operand.vmem [shape: f32[32,16], index: 9, kind: input, shape index: {}]   ;;  %s1247_s10 = inlined_call_operand.vmem [shape: f32[3,16], index: 10, kind: input, shape index: {}]   ;;  %s1248_s11 = inlined_call_operand.vmem [shape: f32[2,8,16], index: 11, kind: output, shape index: {}]  }
   0x1 LB: > { %s847_s18 = sadd.s32 4294967295, %s908_s17   ;;  %p851_p0 = scmp.ge.s32.totalorder %s908_s17, 1  ;;  %s908_s17 = sphi %s980_s17, %s21_s17  }
   0x2   : > { %p336_p1 = scmp.lt.s32.totalorder %s908_s17, 3 }
   0x4   : > { %p337_p2 = pnand %p851_p0, %p336_p1 }
   0x5   : > { %p374_p3 = scmp.lt.s32.totalorder (!%p337_p2), %s847_s18, 1  ;;  %s911_s25 = smov (!%p337_p2), 48  }
   0x6   : > { %340 = sbr.rel (%p337_p2) target bundleno = 1602 (0x642), region = 64  ;;  %s913_s27 = smov (!%p337_p2), 64  }
   0x7   : > { %s914_s28 = smov (!%p337_p2), 32   ;;  %s915_s15 = smov (!%p337_p2), 24  }
   0x8   : > { %s916_s16 = smov (!%p337_p2), 8   ;;  %s917_s20 = smov (!%p337_p2), 120  }
   0x9   : > { %s918_s21 = smov (!%p337_p2), 72   ;;  %s919_s22 = smov (!%p337_p2), 96  }
   0xb   : > { %v390_v0 = vld [vmem:[%s1238_s1 + $0x8] sm:$0xff]  ;;  %v389_v1 = vld [vmem:[%s1238_s1] sm:$0xff]  ;;  %s1250_s18 = smov (!%p374_p3, %s847_s18), 1  ;;  %vm391_vm0 = vcmask 130048   ;;  %vm382_vm1 = vcmask 261120   ;;  %v910_v3 = vmov 0.0  }
   0xc   : > { %409 = vmatpush.msra.mxu0 %v390_v0  ;;  %s852_s23 = sshll.u32 %s1250_s18, 3  ;;  %384 = vst.msk [vmem:[#allocation2 + $0x10] sm:$0xff] %vm382_vm1, %v910_v3  ;;  %v463_v4 = vld [vmem:[%s1240_s3 + $0x48] sm:$0xff]  ;;  %v462_v5 = vld [vmem:[%s1240_s3 + $0x40] sm:$0xff]  ;;  %v461_v6 = vld [vmem:[%s1240_s3 + $0x38] sm:$0xff]  ;;  %vm385_vm3 = vcmask 64512  }
   0xd   : > { %s377_s26 = scalar_lea.vmem %s1237_s0, %s852_s23  ;;  %383 = vst.msk [vmem:[#allocation2] sm:$0xff] %vm382_vm1, %v910_v3  ;;  %474 = vmatpush.msra.mxu1 %v463_v4  ;;  %v460_v7 = vld [vmem:[%s1240_s3 + $0x30] sm:$0xff]  ;;  %v880_v8 = vld [vmem:[%s1239_s2] ss:$0 sm:$0xff]  ;;  %v881_v9 = vld [vmem:[%s1239_s2 + $0x1] ss:$0 sm:$0xff] }
   0xe   : > { %410 = vmatpush.msra.mxu0 %v389_v1  ;;  %v388_v2 = vld [vmem:[%s377_s26] sm:$0xff]  ;;  %s912_s26 = smov 16   ;;  %v459_v20 = vld [vmem:[%s1240_s3 + $0x28] sm:$0xff]  ;;  %v457_v22 = vld [vmem:[%s1240_s3 + $0x18] sm:$0xff]  ;;  %386 = vst.msk [vmem:[#allocation3] sm:$0xff] %vm385_vm3, %v910_v3  ;;  %vm450_vm4 = vcmask 392192  }
   0xf   : > { %854 = vmatmul.msk.f32.vlgmr.msra.gmra.mxu0 %vm391_vm0, %v388_v2  ;;  %475 = vmatpush.msra.mxu1 %v462_v5  ;;  %v882_v12 = vld [vmem:[%s1239_s2 + $0x2] ss:$0 sm:$0xff]  ;;  %v456_v23 = vld [vmem:[%s1240_s3 + $0x10] sm:$0xff]  ;;  %v455_v24 = vld [vmem:[%s1240_s3 + $0x8] sm:$0xff]  ;;  %387 = vst.msk [vmem:[#allocation3 + $0x10] sm:$0xff] %vm385_vm3, %v910_v3  ;;  %vm452_vm5 = vcmask 523264  }
  0x10   : > { %v458_v21 = vld [vmem:[%s1240_s3 + $0x20] sm:$0xff]  ;;  %vm464_vm6 = vcmask 654336   ;;  %v536_v49 = vld [vmem:[%s1241_s4 + $0x18] sm:$0xff]  ;;  %v535_v50 = vld [vmem:[%s1241_s4 + $0x10] sm:$0xff]  ;;  %vm530_vm8 = vcmask 195584   ;;  %vm538_vm9 = vcmask 326656  }
  0x11   : > { %476 = vmatpush.msra.mxu1 %v461_v6  ;;  %v454_v25 = vld [vmem:[%s1240_s3] sm:$0xff]  ;;  %v534_v51 = vld [vmem:[%s1241_s4 + $0x8] sm:$0xff]  ;;  %vm587_vm12 = vcmask 195712   ;;  %vm612_vm13 = vcmask 588800   ;;  %vm614_vm14 = vcmask 785408   ;;  %vm631_vm15 = vcmask 982016  }
  0x12   : > { %v883_v35 = vld [vmem:[%s1242_s5] ss:$0 sm:$0xff]  ;;  %v884_v36 = vld [vmem:[%s1242_s5 + $0x1] ss:$0 sm:$0xff]  ;;  %v885_v39 = vld [vmem:[%s1242_s5 + $0x2] ss:$0 sm:$0xff] }
  0x13   : > { %477 = vmatpush.msra.mxu1 %v460_v7  ;;  %v886_v47 = vld [vmem:[%s1242_s5 + $0x7] ss:$0 sm:$0xff]  ;;  %v887_v0 = vld [vmem:[%s1242_s5 + $0x3] ss:$0 sm:$0xff]  ;;  %v888_v1 = vld [vmem:[%s1242_s5 + $0x4] ss:$0 sm:$0xff] }
  0x14   : > { %v537_v48 = vld [vmem:[%s1241_s4 + $0x20] sm:$0xff] }
  0x15   : > { %478 = vmatpush.msra.mxu1 %v459_v20  ;;  %553 = vmatpush.msra.mxu2 %v537_v48  ;;  %v533_v52 = vld [vmem:[%s1241_s4] sm:$0xff] }
  0x16   : > { %v889_v4 = vld [vmem:[%s1242_s5 + $0x5] ss:$0 sm:$0xff]  ;;  %v890_v7 = vld [vmem:[%s1242_s5 + $0x6] ss:$0 sm:$0xff] }
  0x17   : > { %479 = vmatpush.msra.mxu1 %v458_v21  ;;  %554 = vmatpush.msra.mxu2 %v536_v49  ;;  %v628_v20 = vld [vmem:[%s1243_s6 + $0x60] sm:$0xff]  ;;  %v627_v21 = vld [vmem:[%s1243_s6 + $0x58] sm:$0xff] }
  0x19   : > { %480 = vmatpush.msra.mxu1 %v457_v22  ;;  %555 = vmatpush.msra.mxu2 %v535_v50  ;;  %v626_v22 = vld [vmem:[%s1243_s6 + $0x50] sm:$0xff] }
  0x1b   : > { %481 = vmatpush.msra.mxu1 %v456_v23  ;;  %556 = vmatpush.msra.mxu2 %v534_v51  ;;  %v625_v23 = vld [vmem:[%s1243_s6 + $0x48] sm:$0xff] }
  0x1d   : > { %482 = vmatpush.msra.mxu1 %v455_v24  ;;  %557 = vmatpush.msra.mxu2 %v533_v52  ;;  %v624_v24 = vld [vmem:[%s1243_s6 + $0x40] sm:$0xff] }
  0x1f   : > { %483 = vmatpush.msra.mxu1 %v454_v25  ;;  %v623_v25 = vld [vmem:[%s1243_s6 + $0x38] sm:$0xff] }
  0x8c   : > { %v412_v10 = vpop.f32.mrf.mxu0 }
  0x8d   : > { %v417_v11 = vmul.f32 %v880_v8, %v412_v10 }
  0x8f   : > { %v420_v13 = vadd.f32 %v881_v9, %v417_v11 }
  0x91   : > { %vm422_vm2 = vcmp.ge.f32.partialorder %v420_v13, 0.0  ;;  %v424_v14 = vmul.f32 %v882_v12, %v420_v13 }
  0x93   : > { %v425_v15 = vsel %vm422_vm2, %v420_v13, %v424_v14  ;;  %v630_v13 = vld [vmem:[%s1243_s6 + $0x70] sm:$0xff] }
  0x94   : > { %426 = vst.msk [vmem:[#allocation2 + $0x8] sm:$0xff] %vm391_vm0, %v425_v15  ;;  %636 = vmatpush.msra.mxu3 %v630_v13 }
  0x9b   : > { %v430_v16 = vld [vmem:[#allocation2 + $0x9] sm:$0xff] }
  0x9c   : > { %v428_v17 = vld [vmem:[#allocation2 + $0x7] sm:$0xff]  ;;  %441 = vrot.lane.b32.xlu1 %v430_v16, %s911_s25 }
  0x9d   : > { %433 = vrot.lane.b32.xlu0 %v428_v17, %s912_s26  ;;  %v431_v18 = vld [vmem:[#allocation2 + $0xa] sm:$0xff] }
  0x9e   : > { %v429_v19 = vld [vmem:[#allocation2 + $0x8] sm:$0xff] }
  0x9f   : > { %v427_v28 = vld [vmem:[#allocation2 + $0x6] sm:$0xff] }
  0xa4   : > { %445 = vrot.lane.b32.xlu1 %v431_v18, %s913_s27 }
  0xa5   : > { %437 = vrot.lane.b32.xlu0 %v429_v19, %s914_s28  ;;  %v629_v19 = vld [vmem:[%s1243_s6 + $0x68] sm:$0xff] }
  0xa6   : > { %637 = vmatpush.msra.mxu3 %v629_v19 }
  0xa8   : > { %638 = vmatpush.msra.mxu3 %v628_v20  ;;  %v758_v20 = vld [vmem:[%s1246_s9 + $0x18] sm:$0xff] }
  0xa9   : > { %774 = vmatpush.msrb.mxu2 %v758_v20 }
  0xaa   : > { %639 = vmatpush.msra.mxu3 %v627_v21  ;;  %v757_v21 = vld [vmem:[%s1246_s9 + $0x10] sm:$0xff] }
  0xab   : > { %775 = vmatpush.msrb.mxu2 %v757_v21 }
  0xac   : > { %640 = vmatpush.msra.mxu3 %v626_v22  ;;  %v756_v22 = vld [vmem:[%s1246_s9 + $0x8] sm:$0xff] }
  0xad   : > { %776 = vmatpush.msrb.mxu2 %v756_v22 }
  0xae   : > { %641 = vmatpush.msra.mxu3 %v625_v23  ;;  %v755_v23 = vld [vmem:[%s1246_s9] sm:$0xff] }
  0xaf   : > { %777 = vmatpush.msrb.mxu2 %v755_v23 }
  0xb0   : > { %642 = vmatpush.msra.mxu3 %v624_v24 }
  0xb2   : > { %643 = vmatpush.msra.mxu3 %v623_v25 }
 0x10e   : > { %v442_v26 = vpop.permute.xlu1 %441 }
 0x10f   : > { %v434_v27 = vpop.permute.xlu0 %433 }
 0x110   : > { %v448_v29 = vsel %vm391_vm0, %v427_v28, %v434_v27  ;;  %v621_v27 = vld [vmem:[%s1243_s6 + $0x28] sm:$0xff]  ;;  %v620_v28 = vld [vmem:[%s1243_s6 + $0x20] sm:$0xff] }
 0x116   : > { %v446_v32 = vpop.permute.xlu1 %445 }
 0x117   : > { %v438_v30 = vpop.permute.xlu0 %437 }
 0x118   : > { %v449_v31 = vsel %vm382_vm1, %v448_v29, %v438_v30  ;;  %v619_v29 = vld [vmem:[%s1243_s6 + $0x18] sm:$0xff]  ;;  %v618_v30 = vld [vmem:[%s1243_s6 + $0x10] sm:$0xff] }
 0x119   : > { %v451_v33 = vsel %vm450_vm4, %v449_v31, %v442_v26  ;;  %v622_v26 = vld [vmem:[%s1243_s6 + $0x30] sm:$0xff]  ;;  %v617_v31 = vld [vmem:[%s1243_s6 + $0x8] sm:$0xff] }
 0x11a   : > { %v453_v34 = vsel %vm452_vm5, %v451_v33, %v446_v32  ;;  %644 = vmatpush.msra.mxu3 %v622_v26  ;;  %v616_v32 = vld [vmem:[%s1243_s6] sm:$0xff]  ;;  %vm752_vm5 = vcmask 261312  }
 0x11b   : > { %855 = vmatmul.msk.f32.vlgmr.msra.gmra.mxu1 %vm464_vm6, %v453_v34  ;;  %v899_v26 = vld [vmem:[%s1247_s10] ss:$0 sm:$0xff] }
 0x11c   : > { %645 = vmatpush.msra.mxu3 %v621_v27  ;;  %v900_v27 = vld [vmem:[%s1247_s10 + $0x1] ss:$0 sm:$0xff] }
 0x11e   : > { %646 = vmatpush.msra.mxu3 %v620_v28 }
 0x120   : > { %647 = vmatpush.msra.mxu3 %v619_v29 }
 0x122   : > { %648 = vmatpush.msra.mxu3 %v618_v30  ;;  %v901_v30 = vld [vmem:[%s1247_s10 + $0x2] ss:$0 sm:$0xff] }
 0x124   : > { %649 = vmatpush.msra.mxu3 %v617_v31 }
 0x126   : > { %650 = vmatpush.msra.mxu3 %v616_v32 }
 0x198   : > { %v485_v37 = vpop.f32.mrf.mxu1 }
 0x199   : > { %v490_v38 = vmul.f32 %v883_v35, %v485_v37 }
 0x19b   : > { %v493_v40 = vadd.f32 %v884_v36, %v490_v38 }
 0x19d   : > { %vm495_vm7 = vcmp.ge.f32.partialorder %v493_v40, 0.0  ;;  %v497_v41 = vmul.f32 %v885_v39, %v493_v40 }
 0x19f   : > { %v498_v42 = vsel %vm495_vm7, %v493_v40, %v497_v41 }
 0x1a0   : > { %506 = vst.msk [vmem:[#allocation3 + $0x8] sm:$0xff] %vm385_vm3, %v498_v42  ;;  %v891_v42 = vld [vmem:[%s1245_s8] ss:$0 sm:$0xff] }
 0x1a7   : > { %v511_v43 = vld [vmem:[#allocation3 + $0xa] sm:$0xff] }
 0x1a8   : > { %v510_v44 = vld [vmem:[#allocation3 + $0x9] sm:$0xff]  ;;  %525 = vrot.lane.b32.xlu1 %v511_v43, %s914_s28 }
 0x1a9   : > { %v508_v45 = vld [vmem:[#allocation3 + $0x7] sm:$0xff]  ;;  %521 = vrot.lane.b32.xlu0 %v510_v44, %s915_s15 }
 0x1aa   : > { %513 = vrot.lane.b32.xlu2 %v508_v45, %s916_s16  ;;  %v509_v46 = vld [vmem:[#allocation3 + $0x8] sm:$0xff] }
 0x1ab   : > { %v507_v57 = vld [vmem:[#allocation3 + $0x6] sm:$0xff] }
 0x1ac   : > { %v892_v43 = vld [vmem:[%s1245_s8 + $0x1] ss:$0 sm:$0xff] }
 0x1b2   : > { %517 = vrot.lane.b32.xlu2 %v509_v46, %s912_s26  ;;  %v893_v46 = vld [vmem:[%s1245_s8 + $0x2] ss:$0 sm:$0xff] }
 0x1ba   : > { %502 = vrot.lane.b32.xlu2 %v886_v47, %s916_s16 }
 0x204   : > { %v514_v53 = vpop.permute.xlu2 %513 }
 0x205   : > { %v528_v58 = vsel %vm385_vm3, %v507_v57, %v514_v53  ;;  %v894_v53 = vld [vmem:[%s1245_s8 + $0x7] ss:$0 sm:$0xff]  ;;  %v701_v57 = vld [vmem:[%s1244_s7 + $0x10] sm:$0xff] }
 0x20c   : > { %v518_v54 = vpop.permute.xlu2 %517 }
 0x20d   : > { %v529_v59 = vsel %vm391_vm0, %v528_v58, %v518_v54  ;;  %v700_v58 = vld [vmem:[%s1244_s7 + $0x8] sm:$0xff] }
 0x214   : > { %v503_v55 = vpop.permute.xlu2 %502 }
 0x215   : > { %v505_v56 = vadd.f32 %v503_v55, %v485_v37  ;;  %v703_v55 = vld [vmem:[%s1244_s7 + $0x20] sm:$0xff] }
 0x216   : > { %718 = vmatpush.msrb.mxu0 %v703_v55 }
 0x217   : > { %574 = vrot.lane.b32.xlu0 %v505_v56, %s917_s20  ;;  %v702_v56 = vld [vmem:[%s1244_s7 + $0x18] sm:$0xff] }
 0x218   : > { %719 = vmatpush.msrb.mxu0 %v702_v56 }
 0x21a   : > { %v526_v60 = vpop.permute.xlu1 %525  ;;  %720 = vmatpush.msrb.mxu0 %v701_v57 }
 0x21b   : > { %v522_v61 = vpop.permute.xlu0 %521 }
 0x21c   : > { %v531_v62 = vsel %vm530_vm8, %v529_v59, %v522_v61  ;;  %721 = vmatpush.msrb.mxu0 %v700_v58  ;;  %v699_v59 = vld [vmem:[%s1244_s7] sm:$0xff] }
 0x21d   : > { %v532_v63 = vsel %vm382_vm1, %v531_v62, %v526_v60 }
 0x21e   : > { %856 = vmatmul.msk.f32.vlgmr.msra.gmra.mxu2 %vm538_vm9, %v532_v63  ;;  %722 = vmatpush.msrb.mxu0 %v699_v59 }
 0x289   : > { %v575_v8 = vpop.permute.xlu0 %574 }
 0x2a1   : > { %v559_v2 = vpop.f32.mrf.mxu2 }
 0x2a2   : > { %v564_v3 = vmul.f32 %v887_v0, %v559_v2 }
 0x2a4   : > { %v567_v5 = vadd.f32 %v888_v1, %v564_v3 }
 0x2a6   : > { %vm569_vm10 = vcmp.ge.f32.partialorder %v567_v5, 0.0  ;;  %v571_v6 = vmul.f32 %v889_v4, %v567_v5 }
 0x2a8   : > { %v572_v9 = vsel %vm569_vm10, %v567_v5, %v571_v6 }
 0x2a9   : > { %v577_v10 = vadd.f32 %v575_v8, %v572_v9  ;;  %v896_v8 = vld [vmem:[%s1245_s8 + $0x4] ss:$0 sm:$0xff] }
 0x2ab   : > { %vm579_vm11 = vcmp.ge.f32.partialorder %v577_v10, 0.0  ;;  %v581_v11 = vmul.f32 %v890_v7, %v577_v10  ;;  %v895_v7 = vld [vmem:[%s1245_s8 + $0x3] ss:$0 sm:$0xff] }
 0x2ad   : > { %v582_v12 = vsel %vm579_vm11, %v577_v10, %v581_v11  ;;  %v897_v11 = vld [vmem:[%s1245_s8 + $0x5] ss:$0 sm:$0xff] }
 0x2ae   : > { %584 = vrot.lane.b32.xlu1 %v582_v12, %s912_s26 }
 0x320   : > { %v585_v14 = vpop.permute.xlu1 %584 }
 0x321   : > { %588 = vst.msk [vmem:[#allocation2 + $0x8] sm:$0xff] %vm587_vm12, %v585_v14  ;;  %v898_v14 = vld [vmem:[%s1245_s8 + $0x6] ss:$0 sm:$0xff] }
 0x328   : > { %v592_v15 = vld [vmem:[#allocation2 + $0xa] sm:$0xff] }
 0x329   : > { %v591_v16 = vld [vmem:[#allocation2 + $0x8] sm:$0xff]  ;;  %603 = vrot.lane.b32.xlu1 %v592_v15, %s918_s21 }
 0x32a   : > { %v590_v17 = vld [vmem:[#allocation2 + $0x6] sm:$0xff]  ;;  %599 = vrot.lane.b32.xlu0 %v591_v16, %s911_s25 }
 0x32b   : > { %595 = vrot.lane.b32.xlu2 %v590_v17, %s915_s15  ;;  %v593_v18 = vld [vmem:[#allocation2 + $0xc] sm:$0xff]  ;;  %v589_v34 = vld [vmem:[#allocation2 + $0x4] sm:$0xff] }
 0x333   : > { %607 = vrot.lane.b32.xlu2 %v593_v18, %s919_s22 }
 0x385   : > { %v596_v33 = vpop.permute.xlu2 %595 }
 0x386   : > { %v610_v35 = vsel %vm530_vm8, %v589_v34, %v596_v33 }
 0x38d   : > { %v608_v39 = vpop.permute.xlu2 %607 }
 0x39b   : > { %v604_v36 = vpop.permute.xlu1 %603 }
 0x39c   : > { %v600_v37 = vpop.permute.xlu0 %599 }
 0x39d   : > { %v611_v38 = vsel %vm450_vm4, %v610_v35, %v600_v37 }
 0x39e   : > { %v613_v40 = vsel %vm612_vm13, %v611_v38, %v604_v36 }
 0x39f   : > { %v615_v41 = vsel %vm614_vm14, %v613_v40, %v608_v39 }
 0x3a0   : > { %857 = vmatmul.msk.f32.vlgmr.msra.gmra.mxu3 %vm631_vm15, %v615_v41 }
 0x423   : > { %v652_v44 = vpop.f32.mrf.mxu3 }
 0x424   : > { %v657_v45 = vmul.f32 %v891_v42, %v652_v44 }
 0x426   : > { %v660_v47 = vadd.f32 %v892_v43, %v657_v45 }
 0x428   : > { %vm662_vm2 = vcmp.ge.f32.partialorder %v660_v47, 0.0  ;;  %v664_v48 = vmul.f32 %v893_v46, %v660_v47 }
 0x42a   : > { %v665_v49 = vsel %vm662_vm2, %v660_v47, %v664_v48 }
 0x42b   : > { %673 = vst.msk [vmem:[#allocation3 + $0x8] sm:$0xff] %vm385_vm3, %v665_v49 }
 0x432   : > { %v677_v50 = vld [vmem:[#allocation3 + $0xa] sm:$0xff] }
 0x433   : > { %v676_v51 = vld [vmem:[#allocation3 + $0x8] sm:$0xff]  ;;  %688 = vrot.lane.b32.xlu2 %v677_v50, %s915_s15 }
 0x434   : > { %v675_v52 = vld [vmem:[#allocation3 + $0x6] sm:$0xff]  ;;  %684 = vrot.lane.b32.xlu1 %v676_v51, %s912_s26 }
 0x435   : > { %680 = vrot.lane.b32.xlu0 %v675_v52, %s916_s16  ;;  %v678_v54 = vld [vmem:[#allocation3 + $0xc] sm:$0xff]  ;;  %v674_v62 = vld [vmem:[#allocation3 + $0x4] sm:$0xff] }
 0x43c   : > { %669 = vrot.lane.b32.xlu1 %v894_v53, %s916_s16 }
 0x43d   : > { %692 = vrot.lane.b32.xlu0 %v678_v54, %s914_s28 }
 0x48d   : > { %v689_v1 = vpop.permute.xlu2 %688 }
 0x4a6   : > { %v685_v60 = vpop.permute.xlu1 %684 }
 0x4a7   : > { %v681_v61 = vpop.permute.xlu0 %680 }
 0x4a8   : > { %v695_v63 = vsel %vm385_vm3, %v674_v62, %v681_v61 }
 0x4a9   : > { %v696_v0 = vsel %vm391_vm0, %v695_v63, %v685_v60 }
 0x4aa   : > { %v697_v5 = vsel %vm530_vm8, %v696_v0, %v689_v1 }
 0x4ae   : > { %v670_v2 = vpop.permute.xlu1 %669 }
 0x4af   : > { %v672_v3 = vadd.f32 %v670_v2, %v652_v44  ;;  %v693_v4 = vpop.permute.xlu0 %692 }
 0x4b0   : > { %v698_v6 = vsel %vm382_vm1, %v697_v5, %v693_v4 }
 0x4b1   : > { %858 = vmatmul.msk.f32.vlgmr.msrb.gmra.mxu0 %vm538_vm9, %v698_v6  ;;  %739 = vrot.lane.b32.xlu2 %v672_v3, %s917_s20  ;;  %s381_s20 = scalar_lea.vmem %s1248_s11, %s852_s23 }
 0x50b   : > { %v740_v15 = vpop.permute.xlu2 %739 }
 0x52e   : > { %v724_v9 = vpop.f32.mrf.mxu0 }
 0x52f   : > { %v729_v10 = vmul.f32 %v895_v7, %v724_v9 }
 0x531   : > { %v732_v12 = vadd.f32 %v896_v8, %v729_v10 }
 0x533   : > { %vm734_vm3 = vcmp.ge.f32.partialorder %v732_v12, 0.0  ;;  %v736_v13 = vmul.f32 %v897_v11, %v732_v12 }
 0x535   : > { %v737_v16 = vsel %vm734_vm3, %v732_v12, %v736_v13 }
 0x536   : > { %v742_v17 = vadd.f32 %v740_v15, %v737_v16 }
 0x538   : > { %vm744_vm4 = vcmp.ge.f32.partialorder %v742_v17, 0.0  ;;  %v746_v18 = vmul.f32 %v898_v14, %v742_v17 }
 0x53a   : > { %v747_v19 = vsel %vm744_vm4, %v742_v17, %v746_v18 }
 0x53b   : > { %749 = vrot.lane.b32.xlu0 %v747_v19, %s915_s15 }
 0x5ad   : > { %v750_v24 = vpop.permute.xlu0 %749 }
 0x5ae   : > { %753 = vst.msk [vmem:[#allocation2 + $0x8] sm:$0xff] %vm752_vm5, %v750_v24 }
 0x5b5   : > { %v754_v25 = vld [vmem:[#allocation2 + $0x8] sm:$0xff] }
 0x5b6   : > { %859 = vmatmul.msk.f32.vlgmr.msrb.gmra.mxu2 %vm382_vm1, %v754_v25 }
 0x639   : > { %v779_v28 = vpop.f32.mrf.mxu2 }
 0x63a   : > { %v784_v29 = vmul.f32 %v899_v26, %v779_v28 }
 0x63c   : > { %v787_v31 = vadd.f32 %v900_v27, %v784_v29 }
 0x63e   : > { %vm789_vm1 = vcmp.ge.f32.partialorder %v787_v31, 0.0  ;;  %v791_v32 = vmul.f32 %v901_v30, %v787_v31 }
 0x640   : > { %v792_v33 = vsel %vm789_vm1, %v787_v31, %v791_v32 }
 0x641   : > { %793 = vst.msk [vmem:[%s381_s20] sm:$0xff] %vm391_vm0, %v792_v33 }
 0x642 PF: > { %s21_s17 = sadd.s32 1, %s908_s17  }
 0x643   : > { %p18_p4 = scmp.ge.s32.totalorder %s21_s17, 4  }
 0x645   :  { %20 = sbr.rel (!%p18_p4) target bundleno = 1 (0x1), region = 94 }

</bundles_post_ra>
